<compile_context>
chip_gen: v7x
topology: tpu7x:2x2x1
jax: 0.10.0
libtpu: 0.0.40
codegen_flags: <defaults>
</compile_context>

<pallas_src>
import functools

import jax
import jax.numpy as jnp
from jax import lax
from jax.experimental import pallas as pl
from jax.experimental.pallas import tpu as pltpu


# ----------------------------------------------------------------------------
# Fused decoder kernel (all layers + FC, single invocation)
# ----------------------------------------------------------------------------
def _make_decoder_kernel(num_layers, T, B_pad, H):
    """Builds the fused kernel.

    Kernel ref order:
      inputs : x (T*B_pad, D_in), h0 (L,B_pad,H), c0 (L,B_pad,H),
               then per layer: w_ih_t (D_in,4H), w_hh_t (H,4H), bias (1,4H),
               then w_fc_t (H,O), b_fc (1,O)
      outputs: out (T*B_pad, O), hN (L,B_pad,H), cN (L,B_pad,H)
      scratch: gx_scr (T*B_pad, 4H) f32, y_scr (T*B_pad, H) f32
    """
    n_in = 3 + 3 * num_layers + 2

    def kernel(*refs):
        x_ref, h0_ref, c0_ref = refs[0], refs[1], refs[2]
        wfc_ref, bfc_ref = refs[n_in - 2], refs[n_in - 1]
        out_ref, hN_ref, cN_ref = refs[n_in], refs[n_in + 1], refs[n_in + 2]
        gx_scr, y_scr = refs[n_in + 3], refs[n_in + 4]

        # Lane mask selecting the g-gate lanes (2H..3H) of the packed
        # (B_pad, 4H) gate vreg.  Hoisted out of all loops.
        lane = lax.broadcasted_iota(jnp.int32, (B_pad, 4 * H), 1)
        g_mask = (lane >= 2 * H) & (lane < 3 * H)

        for layer in range(num_layers):
            wih_ref = refs[3 + 3 * layer + 0]          # (D_in, 4H)
            whh_ref = refs[3 + 3 * layer + 1]          # (H, 4H)
            b_ref = refs[3 + 3 * layer + 2]            # (1, 4H)  b_ih + b_hh

            layer_in = (x_ref[...] if layer == 0
                        else y_scr[...]).astype(jnp.float32)   # (T*B_pad, D_in)

            # Hoisted input projection for ALL timesteps: one lane-dense
            # (T*B_pad, 4H) matmul, staged in VMEM scratch.
            gx_scr[...] = (jnp.dot(layer_in, wih_ref[...],
                                   preferred_element_type=jnp.float32)
                           + b_ref[...])

            whh = whh_ref[...].astype(jnp.float32)     # (H, 4H) read once/layer

            def step(t, carry):
                h, c = carry
                row = pl.multiple_of(t * B_pad, B_pad)
                # One MXU pass for all four gates (lane-dense 4H = 128).
                gates = (gx_scr[pl.ds(row, B_pad), :]
                         + jnp.dot(h, whh, preferred_element_type=jnp.float32))
                # Two EUP passes over the full packed vreg, select g lanes.
                sig = jax.nn.sigmoid(gates)
                th = jnp.tanh(gates)
                acts = jnp.where(g_mask, th, sig)
                i_g = acts[:, 0 * H:1 * H]
                f_g = acts[:, 1 * H:2 * H]
                g_g = acts[:, 2 * H:3 * H]
                o_g = acts[:, 3 * H:4 * H]
                c_n = f_g * c + i_g * g_g
                h_n = o_g * jnp.tanh(c_n)
                y_scr[pl.ds(row, B_pad), :] = h_n
                return (h_n, c_n)

            h0 = h0_ref[layer].astype(jnp.float32)     # (B_pad, H)
            c0 = c0_ref[layer].astype(jnp.float32)
            h_f, c_f = lax.fori_loop(0, T, step, (h0, c0), unroll=True)

            hN_ref[layer] = h_f.astype(hN_ref.dtype)
            cN_ref[layer] = c_f.astype(cN_ref.dtype)

        # Fused output projection; one store of the whole output slab.
        out = (jnp.dot(y_scr[...], wfc_ref[...],
                       preferred_element_type=jnp.float32) + bfc_ref[...])
        out_ref[...] = out.astype(out_ref.dtype)

    return kernel


@functools.lru_cache(maxsize=None)
def _build_decoder_call(num_layers, T, B_pad, H, O, dtype_name):
    dt = jnp.dtype(dtype_name)
    n_in = 3 + 3 * num_layers + 2
    return pl.pallas_call(
        _make_decoder_kernel(num_layers, T, B_pad, H),
        out_shape=(
            jax.ShapeDtypeStruct((T * B_pad, O), dt),
            jax.ShapeDtypeStruct((num_layers, B_pad, H), dt),
            jax.ShapeDtypeStruct((num_layers, B_pad, H), dt),
        ),
        in_specs=[pl.BlockSpec(memory_space=pltpu.MemorySpace.VMEM)
                  for _ in range(n_in)],
        out_specs=(pl.BlockSpec(memory_space=pltpu.MemorySpace.VMEM),
                   pl.BlockSpec(memory_space=pltpu.MemorySpace.VMEM),
                   pl.BlockSpec(memory_space=pltpu.MemorySpace.VMEM)),
        scratch_shapes=[
            pltpu.VMEM((T * B_pad, 4 * H), jnp.float32),   # hoisted gates_x
            pltpu.VMEM((T * B_pad, H), jnp.float32),       # per-layer outputs
        ],
        # hidden -> hN, cell -> cN (in-place recurrent state update)
        input_output_aliases={1: 1, 2: 2},
    )
    # TODO(synk): for scaled-up H on v7x (64 MiB VMEM) cast weights to bf16 /
    # tile the 4H axis and set vmem_limit_bytes; unnecessary at these sizes.


# ----------------------------------------------------------------------------
# Module wrapper
# ----------------------------------------------------------------------------
class DecoderPallas:
    """Pallas port of the PyTorch Decoder (nn.LSTM + nn.Linear)."""

    def __init__(self, output_size, hidden_size, num_layers, key):
        self.output_size = output_size
        self.hidden_size = hidden_size
        self.num_layers = num_layers
        H = hidden_size

        bound = 1.0 / (hidden_size ** 0.5)
        keys = jax.random.split(key, num_layers * 4 + 2)
        self.params = []
        for layer in range(num_layers):
            d_in = output_size if layer == 0 else hidden_size
            k_wih, k_whh, k_bih, k_bhh = keys[layer * 4: layer * 4 + 4]
            w_ih = jax.random.uniform(k_wih, (4 * H, d_in), jnp.float32, -bound, bound)
            w_hh = jax.random.uniform(k_whh, (4 * H, H), jnp.float32, -bound, bound)
            b_ih = jax.random.uniform(k_bih, (4 * H,), jnp.float32, -bound, bound)
            b_hh = jax.random.uniform(k_bhh, (4 * H,), jnp.float32, -bound, bound)
            self.params.append({
                "w_ih_t": w_ih.T,                       # (D_in, 4H)
                "w_hh_t": w_hh.T,                       # (H, 4H)  lane-dense
                "bias": (b_ih + b_hh)[None, :],         # (1, 4H)
            })
        k_wfc, k_bfc = keys[-2], keys[-1]
        w_fc = jax.random.uniform(k_wfc, (output_size, H), jnp.float32, -bound, bound)
        b_fc = jax.random.uniform(k_bfc, (output_size,), jnp.float32, -bound, bound)
        self.w_fc_t = w_fc.T                            # (H, O)
        self.b_fc = b_fc[None, :]                       # (1, O)

        # jit the wrapper so padding/transpose fuse around the single
        # custom call and the aliased state buffers are real intermediates.
        self._forward = jax.jit(self._forward_impl)

    def _forward_impl(self, x, hidden, cell):
        B, T, O = x.shape
        H, L = self.hidden_size, self.num_layers
        B_pad = max(8, ((B + 7) // 8) * 8)              # sublane granularity

        # batch-first -> time-major, padded to B_pad rows (row = t*B_pad + b)
        x_t = jnp.transpose(x, (1, 0, 2))               # (T, B, O)
        x_t = jnp.pad(x_t, ((0, 0), (0, B_pad - B), (0, 0)))
        x_flat = x_t.reshape(T * B_pad, O)

        hidden_p = jnp.pad(hidden, ((0, 0), (0, B_pad - B), (0, 0)))
        cell_p = jnp.pad(cell, ((0, 0), (0, B_pad - B), (0, 0)))

        flat_w = []
        for p in self.params:
            flat_w += [p["w_ih_t"], p["w_hh_t"], p["bias"]]

        call = _build_decoder_call(L, T, B_pad, H, self.output_size,
                                   jnp.dtype(x.dtype).name)
        out_flat, hN, cN = call(x_flat, hidden_p, cell_p, *flat_w,
                                self.w_fc_t, self.b_fc)

        out = jnp.transpose(
            out_flat.reshape(T, B_pad, self.output_size)[:, :B, :], (1, 0, 2))
        return out, hN[:, :B, :], cN[:, :B, :]

    def __call__(self, x, hidden, cell):
        """x: (B, T, output_size); hidden, cell: (num_layers, B, H)."""
        return self._forward(x, hidden, cell)


# ----------------------------------------------------------------------------
# Pure-JAX reference (for correctness check)
# ----------------------------------------------------------------------------
def _reference(dec, x, hidden, cell):
    B, T, _ = x.shape
    H = dec.hidden_size
    layer_in = x
    hs, cs = [], []
    for layer in range(dec.num_layers):
        p = dec.params[layer]
        h = hidden[layer]
        c = cell[layer]
        gx = jnp.einsum("btd,dg->btg", layer_in, p["w_ih_t"]) + p["bias"]
        ys = []
        for t in range(T):
            gates = gx[:, t, :] + h @ p["w_hh_t"]
            i = jax.nn.sigmoid(gates[:, 0 * H:1 * H])
            f = jax.nn.sigmoid(gates[:, 1 * H:2 * H])
            g = jnp.tanh(gates[:, 2 * H:3 * H])
            o = jax.nn.sigmoid(gates[:, 3 * H:4 * H])
            c = f * c + i * g
            h = o * jnp.tanh(c)
            ys.append(h)
        layer_in = jnp.stack(ys, axis=1)
        hs.append(h)
        cs.append(c)
    out = layer_in @ dec.w_fc_t + dec.b_fc
    return out, jnp.stack(hs), jnp.stack(cs)


# ----------------------------------------------------------------------------
if __name__ == "__main__":
    B, T = 2, 8
    output_size, hidden_size, num_layers = 4, 32, 2

    key = jax.random.PRNGKey(0)
    k_x, k_h, k_c, k_p = jax.random.split(key, 4)

    x = jax.random.normal(k_x, (B, T, output_size), jnp.float32)
    hidden = jax.random.normal(k_h, (num_layers, B, hidden_size), jnp.float32)
    cell = jax.random.normal(k_c, (num_layers, B, hidden_size), jnp.float32)

    dec = DecoderPallas(output_size, hidden_size, num_layers, k_p)

    out, h_out, c_out = dec(x, hidden, cell)
    jax.block_until_ready((out, h_out, c_out))

    # correctness check against pure-JAX reference
    out_r, h_r, c_r = _reference(dec, x, hidden, cell)
    assert out.shape == (B, T, output_size)
    assert h_out.shape == (num_layers, B, hidden_size)
    assert c_out.shape == (num_layers, B, hidden_size)
    assert jnp.allclose(out, out_r, atol=2e-5)
    assert jnp.allclose(h_out, h_r, atol=2e-5)
    assert jnp.allclose(c_out, c_r, atol=2e-5)

    print("KERNEL_OK")
</pallas_src>

<mosaic_0001>
module attributes {stable_mosaic.version = 11 : i64} {
  func.func @kernel(%arg0: memref<64x4xf32, #tpu.memory_space<vmem>>, %arg1: memref<2x8x32xf32, #tpu.memory_space<vmem>>, %arg2: memref<2x8x32xf32, #tpu.memory_space<vmem>>, %arg3: memref<4x128xf32, #tpu.memory_space<vmem>>, %arg4: memref<32x128xf32, #tpu.memory_space<vmem>>, %arg5: memref<1x128xf32, #tpu.memory_space<vmem>>, %arg6: memref<32x128xf32, #tpu.memory_space<vmem>>, %arg7: memref<32x128xf32, #tpu.memory_space<vmem>>, %arg8: memref<1x128xf32, #tpu.memory_space<vmem>>, %arg9: memref<32x4xf32, #tpu.memory_space<vmem>>, %arg10: memref<1x4xf32, #tpu.memory_space<vmem>>, %arg11: memref<64x4xf32, #tpu.memory_space<vmem>>, %arg12: memref<2x8x32xf32, #tpu.memory_space<vmem>>, %arg13: memref<2x8x32xf32, #tpu.memory_space<vmem>>, %arg14: memref<64x128xf32, #tpu.memory_space<vmem>>, %arg15: memref<64x32xf32, #tpu.memory_space<vmem>>) attributes {dimension_semantics = [], scalar_prefetch = 0 : i64, scratch_operands = 2 : i64, tpu.core_type = #tpu.core_type<tc>} {
    %0 = tpu.iota {dimensions = array<i32: 1>} : vector<8x128xi32>
    %c64_i32 = arith.constant 64 : i32
    %1 = vector.broadcast %c64_i32 : i32 to vector<8x128xi32>
    %2 = arith.cmpi sge, %0, %1 : vector<8x128xi32>
    %c96_i32 = arith.constant 96 : i32
    %3 = vector.broadcast %c96_i32 : i32 to vector<8x128xi32>
    %4 = arith.cmpi slt, %0, %3 : vector<8x128xi32>
    %5 = arith.andi %2, %4 : vector<8x128xi1>
    %c0 = arith.constant 0 : index
    %c0_0 = arith.constant 0 : index
    %6 = vector.load %arg0[%c0, %c0_0] : memref<64x4xf32, #tpu.memory_space<vmem>>, vector<64x4xf32>
    %c0_1 = arith.constant 0 : index
    %c0_2 = arith.constant 0 : index
    %7 = vector.load %arg3[%c0_1, %c0_2] : memref<4x128xf32, #tpu.memory_space<vmem>>, vector<4x128xf32>
    %cst = arith.constant dense<0.000000e+00> : vector<64x128xf32>
    %8 = tpu.matmul %6, %7, %cst {dimension_numbers = #tpu.dot_dimension_numbers<[1], [0], [0], [1], [0, 0, 1, 1], [], []>} : vector<64x4xf32>, vector<4x128xf32>, vector<64x128xf32> -> vector<64x128xf32>
    %c0_3 = arith.constant 0 : index
    %c0_4 = arith.constant 0 : index
    %9 = vector.load %arg5[%c0_3, %c0_4] : memref<1x128xf32, #tpu.memory_space<vmem>>, vector<1x128xf32>
    %10 = vector.broadcast %9 : vector<1x128xf32> to vector<64x128xf32>
    %11 = arith.addf %8, %10 : vector<64x128xf32>
    %c0_5 = arith.constant 0 : index
    %c0_6 = arith.constant 0 : index
    %12 = vector.load %arg14[%c0_5, %c0_6] : memref<64x128xf32, #tpu.memory_space<vmem>>, vector<64x128xf32>
    tpu.vector_store %arg14[%c0_5, %c0_6], %11 {strides = array<i32>} : memref<64x128xf32, #tpu.memory_space<vmem>>, vector<64x128xf32>,
    %c0_7 = arith.constant 0 : index
    %c0_8 = arith.constant 0 : index
    %13 = vector.load %arg4[%c0_7, %c0_8] : memref<32x128xf32, #tpu.memory_space<vmem>>, vector<32x128xf32>
    %c0_9 = arith.constant 0 : index
    %c0_10 = arith.constant 0 : index
    %c0_11 = arith.constant 0 : index
    %14 = vector.load %arg1[%c0_9, %c0_10, %c0_11] : memref<2x8x32xf32, #tpu.memory_space<vmem>>, vector<1x8x32xf32>
    %15 = vector.shape_cast %14 : vector<1x8x32xf32> to vector<8x32xf32>
    %c0_12 = arith.constant 0 : index
    %c0_13 = arith.constant 0 : index
    %c0_14 = arith.constant 0 : index
    %16 = vector.load %arg2[%c0_12, %c0_13, %c0_14] : memref<2x8x32xf32, #tpu.memory_space<vmem>>, vector<1x8x32xf32>
    %17 = vector.shape_cast %16 : vector<1x8x32xf32> to vector<8x32xf32>
    %c0_i32 = arith.constant 0 : i32
    %c8_i32 = arith.constant 8 : i32
    %18 = arith.muli %c0_i32, %c8_i32 : i32
    %19 = tpu.assume_multiple %18, 8 : i32
    %20 = arith.index_cast %19 : i32 to index
    %c0_15 = arith.constant 0 : index
    %21 = vector.load %arg14[%20, %c0_15] : memref<64x128xf32, #tpu.memory_space<vmem>>, vector<8x128xf32>
    %cst_16 = arith.constant dense<0.000000e+00> : vector<8x128xf32>
    %22 = tpu.matmul %15, %13, %cst_16 {dimension_numbers = #tpu.dot_dimension_numbers<[1], [0], [0], [1], [0, 0, 1, 1], [], []>} : vector<8x32xf32>, vector<32x128xf32>, vector<8x128xf32> -> vector<8x128xf32>
    %23 = arith.addf %21, %22 : vector<8x128xf32>
    %24 = arith.negf %23 : vector<8x128xf32>
    %25 = math.exp %24 : vector<8x128xf32>
    %cst_17 = arith.constant 1.000000e+00 : f32
    %26 = vector.broadcast %cst_17 : f32 to vector<8x128xf32>
    %27 = arith.addf %26, %25 : vector<8x128xf32>
    %28 = arith.divf %26, %27 : vector<8x128xf32>
    %29 = math.tanh %23 : vector<8x128xf32>
    %30 = arith.select %5, %29, %28 : vector<8x128xi1>, vector<8x128xf32>
    %31 = vector.extract_strided_slice %30 {offsets = [0, 0], sizes = [8, 32], strides = [1, 1]} : vector<8x128xf32> to vector<8x32xf32>
    %32 = vector.extract_strided_slice %30 {offsets = [0, 32], sizes = [8, 32], strides = [1, 1]} : vector<8x128xf32> to vector<8x32xf32>
    %33 = vector.extract_strided_slice %30 {offsets = [0, 64], sizes = [8, 32], strides = [1, 1]} : vector<8x128xf32> to vector<8x32xf32>
    %34 = vector.extract_strided_slice %30 {offsets = [0, 96], sizes = [8, 32], strides = [1, 1]} : vector<8x128xf32> to vector<8x32xf32>
    %35 = arith.mulf %32, %17 : vector<8x32xf32>
    %36 = arith.mulf %31, %33 : vector<8x32xf32>
    %37 = arith.addf %35, %36 : vector<8x32xf32>
    %38 = math.tanh %37 : vector<8x32xf32>
    %39 = arith.mulf %34, %38 : vector<8x32xf32>
    %40 = arith.index_cast %19 : i32 to index
    %c0_18 = arith.constant 0 : index
    %41 = vector.load %arg15[%40, %c0_18] : memref<64x32xf32, #tpu.memory_space<vmem>>, vector<8x32xf32>
    tpu.vector_store %arg15[%40, %c0_18], %39 {strides = array<i32>} : memref<64x32xf32, #tpu.memory_space<vmem>>, vector<8x32xf32>,
    %c1_i32 = arith.constant 1 : i32
    %c8_i32_19 = arith.constant 8 : i32
    %42 = arith.muli %c1_i32, %c8_i32_19 : i32
    %43 = tpu.assume_multiple %42, 8 : i32
    %44 = arith.index_cast %43 : i32 to index
    %c0_20 = arith.constant 0 : index
    %45 = vector.load %arg14[%44, %c0_20] : memref<64x128xf32, #tpu.memory_space<vmem>>, vector<8x128xf32>
    %cst_21 = arith.constant dense<0.000000e+00> : vector<8x128xf32>
    %46 = tpu.matmul %39, %13, %cst_21 {dimension_numbers = #tpu.dot_dimension_numbers<[1], [0], [0], [1], [0, 0, 1, 1], [], []>} : vector<8x32xf32>, vector<32x128xf32>, vector<8x128xf32> -> vector<8x128xf32>
    %47 = arith.addf %45, %46 : vector<8x128xf32>
    %48 = arith.negf %47 : vector<8x128xf32>
    %49 = math.exp %48 : vector<8x128xf32>
    %cst_22 = arith.constant 1.000000e+00 : f32
    %50 = vector.broadcast %cst_22 : f32 to vector<8x128xf32>
    %51 = arith.addf %50, %49 : vector<8x128xf32>
    %52 = arith.divf %50, %51 : vector<8x128xf32>
    %53 = math.tanh %47 : vector<8x128xf32>
    %54 = arith.select %5, %53, %52 : vector<8x128xi1>, vector<8x128xf32>
    %55 = vector.extract_strided_slice %54 {offsets = [0, 0], sizes = [8, 32], strides = [1, 1]} : vector<8x128xf32> to vector<8x32xf32>
    %56 = vector.extract_strided_slice %54 {offsets = [0, 32], sizes = [8, 32], strides = [1, 1]} : vector<8x128xf32> to vector<8x32xf32>
    %57 = vector.extract_strided_slice %54 {offsets = [0, 64], sizes = [8, 32], strides = [1, 1]} : vector<8x128xf32> to vector<8x32xf32>
    %58 = vector.extract_strided_slice %54 {offsets = [0, 96], sizes = [8, 32], strides = [1, 1]} : vector<8x128xf32> to vector<8x32xf32>
    %59 = arith.mulf %56, %37 : vector<8x32xf32>
    %60 = arith.mulf %55, %57 : vector<8x32xf32>
    %61 = arith.addf %59, %60 : vector<8x32xf32>
    %62 = math.tanh %61 : vector<8x32xf32>
    %63 = arith.mulf %58, %62 : vector<8x32xf32>
    %64 = arith.index_cast %43 : i32 to index
    %c0_23 = arith.constant 0 : index
    %65 = vector.load %arg15[%64, %c0_23] : memref<64x32xf32, #tpu.memory_space<vmem>>, vector<8x32xf32>
    tpu.vector_store %arg15[%64, %c0_23], %63 {strides = array<i32>} : memref<64x32xf32, #tpu.memory_space<vmem>>, vector<8x32xf32>,
    %c2_i32 = arith.constant 2 : i32
    %c8_i32_24 = arith.constant 8 : i32
    %66 = arith.muli %c2_i32, %c8_i32_24 : i32
    %67 = tpu.assume_multiple %66, 8 : i32
    %68 = arith.index_cast %67 : i32 to index
    %c0_25 = arith.constant 0 : index
    %69 = vector.load %arg14[%68, %c0_25] : memref<64x128xf32, #tpu.memory_space<vmem>>, vector<8x128xf32>
    %cst_26 = arith.constant dense<0.000000e+00> : vector<8x128xf32>
    %70 = tpu.matmul %63, %13, %cst_26 {dimension_numbers = #tpu.dot_dimension_numbers<[1], [0], [0], [1], [0, 0, 1, 1], [], []>} : vector<8x32xf32>, vector<32x128xf32>, vector<8x128xf32> -> vector<8x128xf32>
    %71 = arith.addf %69, %70 : vector<8x128xf32>
    %72 = arith.negf %71 : vector<8x128xf32>
    %73 = math.exp %72 : vector<8x128xf32>
    %cst_27 = arith.constant 1.000000e+00 : f32
    %74 = vector.broadcast %cst_27 : f32 to vector<8x128xf32>
    %75 = arith.addf %74, %73 : vector<8x128xf32>
    %76 = arith.divf %74, %75 : vector<8x128xf32>
    %77 = math.tanh %71 : vector<8x128xf32>
    %78 = arith.select %5, %77, %76 : vector<8x128xi1>, vector<8x128xf32>
    %79 = vector.extract_strided_slice %78 {offsets = [0, 0], sizes = [8, 32], strides = [1, 1]} : vector<8x128xf32> to vector<8x32xf32>
    %80 = vector.extract_strided_slice %78 {offsets = [0, 32], sizes = [8, 32], strides = [1, 1]} : vector<8x128xf32> to vector<8x32xf32>
    %81 = vector.extract_strided_slice %78 {offsets = [0, 64], sizes = [8, 32], strides = [1, 1]} : vector<8x128xf32> to vector<8x32xf32>
    %82 = vector.extract_strided_slice %78 {offsets = [0, 96], sizes = [8, 32], strides = [1, 1]} : vector<8x128xf32> to vector<8x32xf32>
    %83 = arith.mulf %80, %61 : vector<8x32xf32>
    %84 = arith.mulf %79, %81 : vector<8x32xf32>
    %85 = arith.addf %83, %84 : vector<8x32xf32>
    %86 = math.tanh %85 : vector<8x32xf32>
    %87 = arith.mulf %82, %86 : vector<8x32xf32>
    %88 = arith.index_cast %67 : i32 to index
    %c0_28 = arith.constant 0 : index
    %89 = vector.load %arg15[%88, %c0_28] : memref<64x32xf32, #tpu.memory_space<vmem>>, vector<8x32xf32>
    tpu.vector_store %arg15[%88, %c0_28], %87 {strides = array<i32>} : memref<64x32xf32, #tpu.memory_space<vmem>>, vector<8x32xf32>,
    %c3_i32 = arith.constant 3 : i32
    %c8_i32_29 = arith.constant 8 : i32
    %90 = arith.muli %c3_i32, %c8_i32_29 : i32
    %91 = tpu.assume_multiple %90, 8 : i32
    %92 = arith.index_cast %91 : i32 to index
    %c0_30 = arith.constant 0 : index
    %93 = vector.load %arg14[%92, %c0_30] : memref<64x128xf32, #tpu.memory_space<vmem>>, vector<8x128xf32>
    %cst_31 = arith.constant dense<0.000000e+00> : vector<8x128xf32>
    %94 = tpu.matmul %87, %13, %cst_31 {dimension_numbers = #tpu.dot_dimension_numbers<[1], [0], [0], [1], [0, 0, 1, 1], [], []>} : vector<8x32xf32>, vector<32x128xf32>, vector<8x128xf32> -> vector<8x128xf32>
    %95 = arith.addf %93, %94 : vector<8x128xf32>
    %96 = arith.negf %95 : vector<8x128xf32>
    %97 = math.exp %96 : vector<8x128xf32>
    %cst_32 = arith.constant 1.000000e+00 : f32
    %98 = vector.broadcast %cst_32 : f32 to vector<8x128xf32>
    %99 = arith.addf %98, %97 : vector<8x128xf32>
    %100 = arith.divf %98, %99 : vector<8x128xf32>
    %101 = math.tanh %95 : vector<8x128xf32>
    %102 = arith.select %5, %101, %100 : vector<8x128xi1>, vector<8x128xf32>
    %103 = vector.extract_strided_slice %102 {offsets = [0, 0], sizes = [8, 32], strides = [1, 1]} : vector<8x128xf32> to vector<8x32xf32>
    %104 = vector.extract_strided_slice %102 {offsets = [0, 32], sizes = [8, 32], strides = [1, 1]} : vector<8x128xf32> to vector<8x32xf32>
    %105 = vector.extract_strided_slice %102 {offsets = [0, 64], sizes = [8, 32], strides = [1, 1]} : vector<8x128xf32> to vector<8x32xf32>
    %106 = vector.extract_strided_slice %102 {offsets = [0, 96], sizes = [8, 32], strides = [1, 1]} : vector<8x128xf32> to vector<8x32xf32>
    %107 = arith.mulf %104, %85 : vector<8x32xf32>
    %108 = arith.mulf %103, %105 : vector<8x32xf32>
    %109 = arith.addf %107, %108 : vector<8x32xf32>
    %110 = math.tanh %109 : vector<8x32xf32>
    %111 = arith.mulf %106, %110 : vector<8x32xf32>
    %112 = arith.index_cast %91 : i32 to index
    %c0_33 = arith.constant 0 : index
    %113 = vector.load %arg15[%112, %c0_33] : memref<64x32xf32, #tpu.memory_space<vmem>>, vector<8x32xf32>
    tpu.vector_store %arg15[%112, %c0_33], %111 {strides = array<i32>} : memref<64x32xf32, #tpu.memory_space<vmem>>, vector<8x32xf32>,
    %c4_i32 = arith.constant 4 : i32
    %c8_i32_34 = arith.constant 8 : i32
    %114 = arith.muli %c4_i32, %c8_i32_34 : i32
    %115 = tpu.assume_multiple %114, 8 : i32
    %116 = arith.index_cast %115 : i32 to index
    %c0_35 = arith.constant 0 : index
    %117 = vector.load %arg14[%116, %c0_35] : memref<64x128xf32, #tpu.memory_space<vmem>>, vector<8x128xf32>
    %cst_36 = arith.constant dense<0.000000e+00> : vector<8x128xf32>
    %118 = tpu.matmul %111, %13, %cst_36 {dimension_numbers = #tpu.dot_dimension_numbers<[1], [0], [0], [1], [0, 0, 1, 1], [], []>} : vector<8x32xf32>, vector<32x128xf32>, vector<8x128xf32> -> vector<8x128xf32>
    %119 = arith.addf %117, %118 : vector<8x128xf32>
    %120 = arith.negf %119 : vector<8x128xf32>
    %121 = math.exp %120 : vector<8x128xf32>
    %cst_37 = arith.constant 1.000000e+00 : f32
    %122 = vector.broadcast %cst_37 : f32 to vector<8x128xf32>
    %123 = arith.addf %122, %121 : vector<8x128xf32>
    %124 = arith.divf %122, %123 : vector<8x128xf32>
    %125 = math.tanh %119 : vector<8x128xf32>
    %126 = arith.select %5, %125, %124 : vector<8x128xi1>, vector<8x128xf32>
    %127 = vector.extract_strided_slice %126 {offsets = [0, 0], sizes = [8, 32], strides = [1, 1]} : vector<8x128xf32> to vector<8x32xf32>
    %128 = vector.extract_strided_slice %126 {offsets = [0, 32], sizes = [8, 32], strides = [1, 1]} : vector<8x128xf32> to vector<8x32xf32>
    %129 = vector.extract_strided_slice %126 {offsets = [0, 64], sizes = [8, 32], strides = [1, 1]} : vector<8x128xf32> to vector<8x32xf32>
    %130 = vector.extract_strided_slice %126 {offsets = [0, 96], sizes = [8, 32], strides = [1, 1]} : vector<8x128xf32> to vector<8x32xf32>
    %131 = arith.mulf %128, %109 : vector<8x32xf32>
    %132 = arith.mulf %127, %129 : vector<8x32xf32>
    %133 = arith.addf %131, %132 : vector<8x32xf32>
    %134 = math.tanh %133 : vector<8x32xf32>
    %135 = arith.mulf %130, %134 : vector<8x32xf32>
    %136 = arith.index_cast %115 : i32 to index
    %c0_38 = arith.constant 0 : index
    %137 = vector.load %arg15[%136, %c0_38] : memref<64x32xf32, #tpu.memory_space<vmem>>, vector<8x32xf32>
    tpu.vector_store %arg15[%136, %c0_38], %135 {strides = array<i32>} : memref<64x32xf32, #tpu.memory_space<vmem>>, vector<8x32xf32>,
    %c5_i32 = arith.constant 5 : i32
    %c8_i32_39 = arith.constant 8 : i32
    %138 = arith.muli %c5_i32, %c8_i32_39 : i32
    %139 = tpu.assume_multiple %138, 8 : i32
    %140 = arith.index_cast %139 : i32 to index
    %c0_40 = arith.constant 0 : index
    %141 = vector.load %arg14[%140, %c0_40] : memref<64x128xf32, #tpu.memory_space<vmem>>, vector<8x128xf32>
    %cst_41 = arith.constant dense<0.000000e+00> : vector<8x128xf32>
    %142 = tpu.matmul %135, %13, %cst_41 {dimension_numbers = #tpu.dot_dimension_numbers<[1], [0], [0], [1], [0, 0, 1, 1], [], []>} : vector<8x32xf32>, vector<32x128xf32>, vector<8x128xf32> -> vector<8x128xf32>
    %143 = arith.addf %141, %142 : vector<8x128xf32>
    %144 = arith.negf %143 : vector<8x128xf32>
    %145 = math.exp %144 : vector<8x128xf32>
    %cst_42 = arith.constant 1.000000e+00 : f32
    %146 = vector.broadcast %cst_42 : f32 to vector<8x128xf32>
    %147 = arith.addf %146, %145 : vector<8x128xf32>
    %148 = arith.divf %146, %147 : vector<8x128xf32>
    %149 = math.tanh %143 : vector<8x128xf32>
    %150 = arith.select %5, %149, %148 : vector<8x128xi1>, vector<8x128xf32>
    %151 = vector.extract_strided_slice %150 {offsets = [0, 0], sizes = [8, 32], strides = [1, 1]} : vector<8x128xf32> to vector<8x32xf32>
    %152 = vector.extract_strided_slice %150 {offsets = [0, 32], sizes = [8, 32], strides = [1, 1]} : vector<8x128xf32> to vector<8x32xf32>
    %153 = vector.extract_strided_slice %150 {offsets = [0, 64], sizes = [8, 32], strides = [1, 1]} : vector<8x128xf32> to vector<8x32xf32>
    %154 = vector.extract_strided_slice %150 {offsets = [0, 96], sizes = [8, 32], strides = [1, 1]} : vector<8x128xf32> to vector<8x32xf32>
    %155 = arith.mulf %152, %133 : vector<8x32xf32>
    %156 = arith.mulf %151, %153 : vector<8x32xf32>
    %157 = arith.addf %155, %156 : vector<8x32xf32>
    %158 = math.tanh %157 : vector<8x32xf32>
    %159 = arith.mulf %154, %158 : vector<8x32xf32>
    %160 = arith.index_cast %139 : i32 to index
    %c0_43 = arith.constant 0 : index
    %161 = vector.load %arg15[%160, %c0_43] : memref<64x32xf32, #tpu.memory_space<vmem>>, vector<8x32xf32>
    tpu.vector_store %arg15[%160, %c0_43], %159 {strides = array<i32>} : memref<64x32xf32, #tpu.memory_space<vmem>>, vector<8x32xf32>,
    %c6_i32 = arith.constant 6 : i32
    %c8_i32_44 = arith.constant 8 : i32
    %162 = arith.muli %c6_i32, %c8_i32_44 : i32
    %163 = tpu.assume_multiple %162, 8 : i32
    %164 = arith.index_cast %163 : i32 to index
    %c0_45 = arith.constant 0 : index
    %165 = vector.load %arg14[%164, %c0_45] : memref<64x128xf32, #tpu.memory_space<vmem>>, vector<8x128xf32>
    %cst_46 = arith.constant dense<0.000000e+00> : vector<8x128xf32>
    %166 = tpu.matmul %159, %13, %cst_46 {dimension_numbers = #tpu.dot_dimension_numbers<[1], [0], [0], [1], [0, 0, 1, 1], [], []>} : vector<8x32xf32>, vector<32x128xf32>, vector<8x128xf32> -> vector<8x128xf32>
    %167 = arith.addf %165, %166 : vector<8x128xf32>
    %168 = arith.negf %167 : vector<8x128xf32>
    %169 = math.exp %168 : vector<8x128xf32>
    %cst_47 = arith.constant 1.000000e+00 : f32
    %170 = vector.broadcast %cst_47 : f32 to vector<8x128xf32>
    %171 = arith.addf %170, %169 : vector<8x128xf32>
    %172 = arith.divf %170, %171 : vector<8x128xf32>
    %173 = math.tanh %167 : vector<8x128xf32>
    %174 = arith.select %5, %173, %172 : vector<8x128xi1>, vector<8x128xf32>
    %175 = vector.extract_strided_slice %174 {offsets = [0, 0], sizes = [8, 32], strides = [1, 1]} : vector<8x128xf32> to vector<8x32xf32>
    %176 = vector.extract_strided_slice %174 {offsets = [0, 32], sizes = [8, 32], strides = [1, 1]} : vector<8x128xf32> to vector<8x32xf32>
    %177 = vector.extract_strided_slice %174 {offsets = [0, 64], sizes = [8, 32], strides = [1, 1]} : vector<8x128xf32> to vector<8x32xf32>
    %178 = vector.extract_strided_slice %174 {offsets = [0, 96], sizes = [8, 32], strides = [1, 1]} : vector<8x128xf32> to vector<8x32xf32>
    %179 = arith.mulf %176, %157 : vector<8x32xf32>
    %180 = arith.mulf %175, %177 : vector<8x32xf32>
    %181 = arith.addf %179, %180 : vector<8x32xf32>
    %182 = math.tanh %181 : vector<8x32xf32>
    %183 = arith.mulf %178, %182 : vector<8x32xf32>
    %184 = arith.index_cast %163 : i32 to index
    %c0_48 = arith.constant 0 : index
    %185 = vector.load %arg15[%184, %c0_48] : memref<64x32xf32, #tpu.memory_space<vmem>>, vector<8x32xf32>
    tpu.vector_store %arg15[%184, %c0_48], %183 {strides = array<i32>} : memref<64x32xf32, #tpu.memory_space<vmem>>, vector<8x32xf32>,
    %c7_i32 = arith.constant 7 : i32
    %c8_i32_49 = arith.constant 8 : i32
    %186 = arith.muli %c7_i32, %c8_i32_49 : i32
    %187 = tpu.assume_multiple %186, 8 : i32
    %188 = arith.index_cast %187 : i32 to index
    %c0_50 = arith.constant 0 : index
    %189 = vector.load %arg14[%188, %c0_50] : memref<64x128xf32, #tpu.memory_space<vmem>>, vector<8x128xf32>
    %cst_51 = arith.constant dense<0.000000e+00> : vector<8x128xf32>
    %190 = tpu.matmul %183, %13, %cst_51 {dimension_numbers = #tpu.dot_dimension_numbers<[1], [0], [0], [1], [0, 0, 1, 1], [], []>} : vector<8x32xf32>, vector<32x128xf32>, vector<8x128xf32> -> vector<8x128xf32>
    %191 = arith.addf %189, %190 : vector<8x128xf32>
    %192 = arith.negf %191 : vector<8x128xf32>
    %193 = math.exp %192 : vector<8x128xf32>
    %cst_52 = arith.constant 1.000000e+00 : f32
    %194 = vector.broadcast %cst_52 : f32 to vector<8x128xf32>
    %195 = arith.addf %194, %193 : vector<8x128xf32>
    %196 = arith.divf %194, %195 : vector<8x128xf32>
    %197 = math.tanh %191 : vector<8x128xf32>
    %198 = arith.select %5, %197, %196 : vector<8x128xi1>, vector<8x128xf32>
    %199 = vector.extract_strided_slice %198 {offsets = [0, 0], sizes = [8, 32], strides = [1, 1]} : vector<8x128xf32> to vector<8x32xf32>
    %200 = vector.extract_strided_slice %198 {offsets = [0, 32], sizes = [8, 32], strides = [1, 1]} : vector<8x128xf32> to vector<8x32xf32>
    %201 = vector.extract_strided_slice %198 {offsets = [0, 64], sizes = [8, 32], strides = [1, 1]} : vector<8x128xf32> to vector<8x32xf32>
    %202 = vector.extract_strided_slice %198 {offsets = [0, 96], sizes = [8, 32], strides = [1, 1]} : vector<8x128xf32> to vector<8x32xf32>
    %203 = arith.mulf %200, %181 : vector<8x32xf32>
    %204 = arith.mulf %199, %201 : vector<8x32xf32>
    %205 = arith.addf %203, %204 : vector<8x32xf32>
    %206 = math.tanh %205 : vector<8x32xf32>
    %207 = arith.mulf %202, %206 : vector<8x32xf32>
    %208 = arith.index_cast %187 : i32 to index
    %c0_53 = arith.constant 0 : index
    %209 = vector.load %arg15[%208, %c0_53] : memref<64x32xf32, #tpu.memory_space<vmem>>, vector<8x32xf32>
    tpu.vector_store %arg15[%208, %c0_53], %207 {strides = array<i32>} : memref<64x32xf32, #tpu.memory_space<vmem>>, vector<8x32xf32>,
    %c8_i32_54 = arith.constant 8 : i32
    %c0_55 = arith.constant 0 : index
    %c0_56 = arith.constant 0 : index
    %c0_57 = arith.constant 0 : index
    %210 = vector.load %arg12[%c0_55, %c0_56, %c0_57] : memref<2x8x32xf32, #tpu.memory_space<vmem>>, vector<1x8x32xf32>
    %211 = vector.shape_cast %210 : vector<1x8x32xf32> to vector<8x32xf32>
    %212 = vector.shape_cast %207 : vector<8x32xf32> to vector<1x8x32xf32>
    tpu.vector_store %arg12[%c0_55, %c0_56, %c0_57], %212 {strides = array<i32>} : memref<2x8x32xf32, #tpu.memory_space<vmem>>, vector<1x8x32xf32>,
    %c0_58 = arith.constant 0 : index
    %c0_59 = arith.constant 0 : index
    %c0_60 = arith.constant 0 : index
    %213 = vector.load %arg13[%c0_58, %c0_59, %c0_60] : memref<2x8x32xf32, #tpu.memory_space<vmem>>, vector<1x8x32xf32>
    %214 = vector.shape_cast %213 : vector<1x8x32xf32> to vector<8x32xf32>
    %215 = vector.shape_cast %205 : vector<8x32xf32> to vector<1x8x32xf32>
    tpu.vector_store %arg13[%c0_58, %c0_59, %c0_60], %215 {strides = array<i32>} : memref<2x8x32xf32, #tpu.memory_space<vmem>>, vector<1x8x32xf32>,
    %c0_61 = arith.constant 0 : index
    %c0_62 = arith.constant 0 : index
    %216 = vector.load %arg15[%c0_61, %c0_62] : memref<64x32xf32, #tpu.memory_space<vmem>>, vector<64x32xf32>
    %c0_63 = arith.constant 0 : index
    %c0_64 = arith.constant 0 : index
    %217 = vector.load %arg6[%c0_63, %c0_64] : memref<32x128xf32, #tpu.memory_space<vmem>>, vector<32x128xf32>
    %cst_65 = arith.constant dense<0.000000e+00> : vector<64x128xf32>
    %218 = tpu.matmul %216, %217, %cst_65 {dimension_numbers = #tpu.dot_dimension_numbers<[1], [0], [0], [1], [0, 0, 1, 1], [], []>} : vector<64x32xf32>, vector<32x128xf32>, vector<64x128xf32> -> vector<64x128xf32>
    %c0_66 = arith.constant 0 : index
    %c0_67 = arith.constant 0 : index
    %219 = vector.load %arg8[%c0_66, %c0_67] : memref<1x128xf32, #tpu.memory_space<vmem>>, vector<1x128xf32>
    %220 = vector.broadcast %219 : vector<1x128xf32> to vector<64x128xf32>
    %221 = arith.addf %218, %220 : vector<64x128xf32>
    %c0_68 = arith.constant 0 : index
    %c0_69 = arith.constant 0 : index
    %222 = vector.load %arg14[%c0_68, %c0_69] : memref<64x128xf32, #tpu.memory_space<vmem>>, vector<64x128xf32>
    tpu.vector_store %arg14[%c0_68, %c0_69], %221 {strides = array<i32>} : memref<64x128xf32, #tpu.memory_space<vmem>>, vector<64x128xf32>,
    %c0_70 = arith.constant 0 : index
    %c0_71 = arith.constant 0 : index
    %223 = vector.load %arg7[%c0_70, %c0_71] : memref<32x128xf32, #tpu.memory_space<vmem>>, vector<32x128xf32>
    %c1 = arith.constant 1 : index
    %c0_72 = arith.constant 0 : index
    %c0_73 = arith.constant 0 : index
    %224 = vector.load %arg1[%c1, %c0_72, %c0_73] : memref<2x8x32xf32, #tpu.memory_space<vmem>>, vector<1x8x32xf32>
    %225 = vector.shape_cast %224 : vector<1x8x32xf32> to vector<8x32xf32>
    %c1_74 = arith.constant 1 : index
    %c0_75 = arith.constant 0 : index
    %c0_76 = arith.constant 0 : index
    %226 = vector.load %arg2[%c1_74, %c0_75, %c0_76] : memref<2x8x32xf32, #tpu.memory_space<vmem>>, vector<1x8x32xf32>
    %227 = vector.shape_cast %226 : vector<1x8x32xf32> to vector<8x32xf32>
    %c0_i32_77 = arith.constant 0 : i32
    %c8_i32_78 = arith.constant 8 : i32
    %228 = arith.muli %c0_i32_77, %c8_i32_78 : i32
    %229 = tpu.assume_multiple %228, 8 : i32
    %230 = arith.index_cast %229 : i32 to index
    %c0_79 = arith.constant 0 : index
    %231 = vector.load %arg14[%230, %c0_79] : memref<64x128xf32, #tpu.memory_space<vmem>>, vector<8x128xf32>
    %cst_80 = arith.constant dense<0.000000e+00> : vector<8x128xf32>
    %232 = tpu.matmul %225, %223, %cst_80 {dimension_numbers = #tpu.dot_dimension_numbers<[1], [0], [0], [1], [0, 0, 1, 1], [], []>} : vector<8x32xf32>, vector<32x128xf32>, vector<8x128xf32> -> vector<8x128xf32>
    %233 = arith.addf %231, %232 : vector<8x128xf32>
    %234 = arith.negf %233 : vector<8x128xf32>
    %235 = math.exp %234 : vector<8x128xf32>
    %cst_81 = arith.constant 1.000000e+00 : f32
    %236 = vector.broadcast %cst_81 : f32 to vector<8x128xf32>
    %237 = arith.addf %236, %235 : vector<8x128xf32>
    %238 = arith.divf %236, %237 : vector<8x128xf32>
    %239 = math.tanh %233 : vector<8x128xf32>
    %240 = arith.select %5, %239, %238 : vector<8x128xi1>, vector<8x128xf32>
    %241 = vector.extract_strided_slice %240 {offsets = [0, 0], sizes = [8, 32], strides = [1, 1]} : vector<8x128xf32> to vector<8x32xf32>
    %242 = vector.extract_strided_slice %240 {offsets = [0, 32], sizes = [8, 32], strides = [1, 1]} : vector<8x128xf32> to vector<8x32xf32>
    %243 = vector.extract_strided_slice %240 {offsets = [0, 64], sizes = [8, 32], strides = [1, 1]} : vector<8x128xf32> to vector<8x32xf32>
    %244 = vector.extract_strided_slice %240 {offsets = [0, 96], sizes = [8, 32], strides = [1, 1]} : vector<8x128xf32> to vector<8x32xf32>
    %245 = arith.mulf %242, %227 : vector<8x32xf32>
    %246 = arith.mulf %241, %243 : vector<8x32xf32>
    %247 = arith.addf %245, %246 : vector<8x32xf32>
    %248 = math.tanh %247 : vector<8x32xf32>
    %249 = arith.mulf %244, %248 : vector<8x32xf32>
    %250 = arith.index_cast %229 : i32 to index
    %c0_82 = arith.constant 0 : index
    %251 = vector.load %arg15[%250, %c0_82] : memref<64x32xf32, #tpu.memory_space<vmem>>, vector<8x32xf32>
    tpu.vector_store %arg15[%250, %c0_82], %249 {strides = array<i32>} : memref<64x32xf32, #tpu.memory_space<vmem>>, vector<8x32xf32>,
    %c1_i32_83 = arith.constant 1 : i32
    %c8_i32_84 = arith.constant 8 : i32
    %252 = arith.muli %c1_i32_83, %c8_i32_84 : i32
    %253 = tpu.assume_multiple %252, 8 : i32
    %254 = arith.index_cast %253 : i32 to index
    %c0_85 = arith.constant 0 : index
    %255 = vector.load %arg14[%254, %c0_85] : memref<64x128xf32, #tpu.memory_space<vmem>>, vector<8x128xf32>
    %cst_86 = arith.constant dense<0.000000e+00> : vector<8x128xf32>
    %256 = tpu.matmul %249, %223, %cst_86 {dimension_numbers = #tpu.dot_dimension_numbers<[1], [0], [0], [1], [0, 0, 1, 1], [], []>} : vector<8x32xf32>, vector<32x128xf32>, vector<8x128xf32> -> vector<8x128xf32>
    %257 = arith.addf %255, %256 : vector<8x128xf32>
    %258 = arith.negf %257 : vector<8x128xf32>
    %259 = math.exp %258 : vector<8x128xf32>
    %cst_87 = arith.constant 1.000000e+00 : f32
    %260 = vector.broadcast %cst_87 : f32 to vector<8x128xf32>
    %261 = arith.addf %260, %259 : vector<8x128xf32>
    %262 = arith.divf %260, %261 : vector<8x128xf32>
    %263 = math.tanh %257 : vector<8x128xf32>
    %264 = arith.select %5, %263, %262 : vector<8x128xi1>, vector<8x128xf32>
    %265 = vector.extract_strided_slice %264 {offsets = [0, 0], sizes = [8, 32], strides = [1, 1]} : vector<8x128xf32> to vector<8x32xf32>
    %266 = vector.extract_strided_slice %264 {offsets = [0, 32], sizes = [8, 32], strides = [1, 1]} : vector<8x128xf32> to vector<8x32xf32>
    %267 = vector.extract_strided_slice %264 {offsets = [0, 64], sizes = [8, 32], strides = [1, 1]} : vector<8x128xf32> to vector<8x32xf32>
    %268 = vector.extract_strided_slice %264 {offsets = [0, 96], sizes = [8, 32], strides = [1, 1]} : vector<8x128xf32> to vector<8x32xf32>
    %269 = arith.mulf %266, %247 : vector<8x32xf32>
    %270 = arith.mulf %265, %267 : vector<8x32xf32>
    %271 = arith.addf %269, %270 : vector<8x32xf32>
    %272 = math.tanh %271 : vector<8x32xf32>
    %273 = arith.mulf %268, %272 : vector<8x32xf32>
    %274 = arith.index_cast %253 : i32 to index
    %c0_88 = arith.constant 0 : index
    %275 = vector.load %arg15[%274, %c0_88] : memref<64x32xf32, #tpu.memory_space<vmem>>, vector<8x32xf32>
    tpu.vector_store %arg15[%274, %c0_88], %273 {strides = array<i32>} : memref<64x32xf32, #tpu.memory_space<vmem>>, vector<8x32xf32>,
    %c2_i32_89 = arith.constant 2 : i32
    %c8_i32_90 = arith.constant 8 : i32
    %276 = arith.muli %c2_i32_89, %c8_i32_90 : i32
    %277 = tpu.assume_multiple %276, 8 : i32
    %278 = arith.index_cast %277 : i32 to index
    %c0_91 = arith.constant 0 : index
    %279 = vector.load %arg14[%278, %c0_91] : memref<64x128xf32, #tpu.memory_space<vmem>>, vector<8x128xf32>
    %cst_92 = arith.constant dense<0.000000e+00> : vector<8x128xf32>
    %280 = tpu.matmul %273, %223, %cst_92 {dimension_numbers = #tpu.dot_dimension_numbers<[1], [0], [0], [1], [0, 0, 1, 1], [], []>} : vector<8x32xf32>, vector<32x128xf32>, vector<8x128xf32> -> vector<8x128xf32>
    %281 = arith.addf %279, %280 : vector<8x128xf32>
    %282 = arith.negf %281 : vector<8x128xf32>
    %283 = math.exp %282 : vector<8x128xf32>
    %cst_93 = arith.constant 1.000000e+00 : f32
    %284 = vector.broadcast %cst_93 : f32 to vector<8x128xf32>
    %285 = arith.addf %284, %283 : vector<8x128xf32>
    %286 = arith.divf %284, %285 : vector<8x128xf32>
    %287 = math.tanh %281 : vector<8x128xf32>
    %288 = arith.select %5, %287, %286 : vector<8x128xi1>, vector<8x128xf32>
    %289 = vector.extract_strided_slice %288 {offsets = [0, 0], sizes = [8, 32], strides = [1, 1]} : vector<8x128xf32> to vector<8x32xf32>
    %290 = vector.extract_strided_slice %288 {offsets = [0, 32], sizes = [8, 32], strides = [1, 1]} : vector<8x128xf32> to vector<8x32xf32>
    %291 = vector.extract_strided_slice %288 {offsets = [0, 64], sizes = [8, 32], strides = [1, 1]} : vector<8x128xf32> to vector<8x32xf32>
    %292 = vector.extract_strided_slice %288 {offsets = [0, 96], sizes = [8, 32], strides = [1, 1]} : vector<8x128xf32> to vector<8x32xf32>
    %293 = arith.mulf %290, %271 : vector<8x32xf32>
    %294 = arith.mulf %289, %291 : vector<8x32xf32>
    %295 = arith.addf %293, %294 : vector<8x32xf32>
    %296 = math.tanh %295 : vector<8x32xf32>
    %297 = arith.mulf %292, %296 : vector<8x32xf32>
    %298 = arith.index_cast %277 : i32 to index
    %c0_94 = arith.constant 0 : index
    %299 = vector.load %arg15[%298, %c0_94] : memref<64x32xf32, #tpu.memory_space<vmem>>, vector<8x32xf32>
    tpu.vector_store %arg15[%298, %c0_94], %297 {strides = array<i32>} : memref<64x32xf32, #tpu.memory_space<vmem>>, vector<8x32xf32>,
    %c3_i32_95 = arith.constant 3 : i32
    %c8_i32_96 = arith.constant 8 : i32
    %300 = arith.muli %c3_i32_95, %c8_i32_96 : i32
    %301 = tpu.assume_multiple %300, 8 : i32
    %302 = arith.index_cast %301 : i32 to index
    %c0_97 = arith.constant 0 : index
    %303 = vector.load %arg14[%302, %c0_97] : memref<64x128xf32, #tpu.memory_space<vmem>>, vector<8x128xf32>
    %cst_98 = arith.constant dense<0.000000e+00> : vector<8x128xf32>
    %304 = tpu.matmul %297, %223, %cst_98 {dimension_numbers = #tpu.dot_dimension_numbers<[1], [0], [0], [1], [0, 0, 1, 1], [], []>} : vector<8x32xf32>, vector<32x128xf32>, vector<8x128xf32> -> vector<8x128xf32>
    %305 = arith.addf %303, %304 : vector<8x128xf32>
    %306 = arith.negf %305 : vector<8x128xf32>
    %307 = math.exp %306 : vector<8x128xf32>
    %cst_99 = arith.constant 1.000000e+00 : f32
    %308 = vector.broadcast %cst_99 : f32 to vector<8x128xf32>
    %309 = arith.addf %308, %307 : vector<8x128xf32>
    %310 = arith.divf %308, %309 : vector<8x128xf32>
    %311 = math.tanh %305 : vector<8x128xf32>
    %312 = arith.select %5, %311, %310 : vector<8x128xi1>, vector<8x128xf32>
    %313 = vector.extract_strided_slice %312 {offsets = [0, 0], sizes = [8, 32], strides = [1, 1]} : vector<8x128xf32> to vector<8x32xf32>
    %314 = vector.extract_strided_slice %312 {offsets = [0, 32], sizes = [8, 32], strides = [1, 1]} : vector<8x128xf32> to vector<8x32xf32>
    %315 = vector.extract_strided_slice %312 {offsets = [0, 64], sizes = [8, 32], strides = [1, 1]} : vector<8x128xf32> to vector<8x32xf32>
    %316 = vector.extract_strided_slice %312 {offsets = [0, 96], sizes = [8, 32], strides = [1, 1]} : vector<8x128xf32> to vector<8x32xf32>
    %317 = arith.mulf %314, %295 : vector<8x32xf32>
    %318 = arith.mulf %313, %315 : vector<8x32xf32>
    %319 = arith.addf %317, %318 : vector<8x32xf32>
    %320 = math.tanh %319 : vector<8x32xf32>
    %321 = arith.mulf %316, %320 : vector<8x32xf32>
    %322 = arith.index_cast %301 : i32 to index
    %c0_100 = arith.constant 0 : index
    %323 = vector.load %arg15[%322, %c0_100] : memref<64x32xf32, #tpu.memory_space<vmem>>, vector<8x32xf32>
    tpu.vector_store %arg15[%322, %c0_100], %321 {strides = array<i32>} : memref<64x32xf32, #tpu.memory_space<vmem>>, vector<8x32xf32>,
    %c4_i32_101 = arith.constant 4 : i32
    %c8_i32_102 = arith.constant 8 : i32
    %324 = arith.muli %c4_i32_101, %c8_i32_102 : i32
    %325 = tpu.assume_multiple %324, 8 : i32
    %326 = arith.index_cast %325 : i32 to index
    %c0_103 = arith.constant 0 : index
    %327 = vector.load %arg14[%326, %c0_103] : memref<64x128xf32, #tpu.memory_space<vmem>>, vector<8x128xf32>
    %cst_104 = arith.constant dense<0.000000e+00> : vector<8x128xf32>
    %328 = tpu.matmul %321, %223, %cst_104 {dimension_numbers = #tpu.dot_dimension_numbers<[1], [0], [0], [1], [0, 0, 1, 1], [], []>} : vector<8x32xf32>, vector<32x128xf32>, vector<8x128xf32> -> vector<8x128xf32>
    %329 = arith.addf %327, %328 : vector<8x128xf32>
    %330 = arith.negf %329 : vector<8x128xf32>
    %331 = math.exp %330 : vector<8x128xf32>
    %cst_105 = arith.constant 1.000000e+00 : f32
    %332 = vector.broadcast %cst_105 : f32 to vector<8x128xf32>
    %333 = arith.addf %332, %331 : vector<8x128xf32>
    %334 = arith.divf %332, %333 : vector<8x128xf32>
    %335 = math.tanh %329 : vector<8x128xf32>
    %336 = arith.select %5, %335, %334 : vector<8x128xi1>, vector<8x128xf32>
    %337 = vector.extract_strided_slice %336 {offsets = [0, 0], sizes = [8, 32], strides = [1, 1]} : vector<8x128xf32> to vector<8x32xf32>
    %338 = vector.extract_strided_slice %336 {offsets = [0, 32], sizes = [8, 32], strides = [1, 1]} : vector<8x128xf32> to vector<8x32xf32>
    %339 = vector.extract_strided_slice %336 {offsets = [0, 64], sizes = [8, 32], strides = [1, 1]} : vector<8x128xf32> to vector<8x32xf32>
    %340 = vector.extract_strided_slice %336 {offsets = [0, 96], sizes = [8, 32], strides = [1, 1]} : vector<8x128xf32> to vector<8x32xf32>
    %341 = arith.mulf %338, %319 : vector<8x32xf32>
    %342 = arith.mulf %337, %339 : vector<8x32xf32>
    %343 = arith.addf %341, %342 : vector<8x32xf32>
    %344 = math.tanh %343 : vector<8x32xf32>
    %345 = arith.mulf %340, %344 : vector<8x32xf32>
    %346 = arith.index_cast %325 : i32 to index
    %c0_106 = arith.constant 0 : index
    %347 = vector.load %arg15[%346, %c0_106] : memref<64x32xf32, #tpu.memory_space<vmem>>, vector<8x32xf32>
    tpu.vector_store %arg15[%346, %c0_106], %345 {strides = array<i32>} : memref<64x32xf32, #tpu.memory_space<vmem>>, vector<8x32xf32>,
    %c5_i32_107 = arith.constant 5 : i32
    %c8_i32_108 = arith.constant 8 : i32
    %348 = arith.muli %c5_i32_107, %c8_i32_108 : i32
    %349 = tpu.assume_multiple %348, 8 : i32
    %350 = arith.index_cast %349 : i32 to index
    %c0_109 = arith.constant 0 : index
    %351 = vector.load %arg14[%350, %c0_109] : memref<64x128xf32, #tpu.memory_space<vmem>>, vector<8x128xf32>
    %cst_110 = arith.constant dense<0.000000e+00> : vector<8x128xf32>
    %352 = tpu.matmul %345, %223, %cst_110 {dimension_numbers = #tpu.dot_dimension_numbers<[1], [0], [0], [1], [0, 0, 1, 1], [], []>} : vector<8x32xf32>, vector<32x128xf32>, vector<8x128xf32> -> vector<8x128xf32>
    %353 = arith.addf %351, %352 : vector<8x128xf32>
    %354 = arith.negf %353 : vector<8x128xf32>
    %355 = math.exp %354 : vector<8x128xf32>
    %cst_111 = arith.constant 1.000000e+00 : f32
    %356 = vector.broadcast %cst_111 : f32 to vector<8x128xf32>
    %357 = arith.addf %356, %355 : vector<8x128xf32>
    %358 = arith.divf %356, %357 : vector<8x128xf32>
    %359 = math.tanh %353 : vector<8x128xf32>
    %360 = arith.select %5, %359, %358 : vector<8x128xi1>, vector<8x128xf32>
    %361 = vector.extract_strided_slice %360 {offsets = [0, 0], sizes = [8, 32], strides = [1, 1]} : vector<8x128xf32> to vector<8x32xf32>
    %362 = vector.extract_strided_slice %360 {offsets = [0, 32], sizes = [8, 32], strides = [1, 1]} : vector<8x128xf32> to vector<8x32xf32>
    %363 = vector.extract_strided_slice %360 {offsets = [0, 64], sizes = [8, 32], strides = [1, 1]} : vector<8x128xf32> to vector<8x32xf32>
    %364 = vector.extract_strided_slice %360 {offsets = [0, 96], sizes = [8, 32], strides = [1, 1]} : vector<8x128xf32> to vector<8x32xf32>
    %365 = arith.mulf %362, %343 : vector<8x32xf32>
    %366 = arith.mulf %361, %363 : vector<8x32xf32>
    %367 = arith.addf %365, %366 : vector<8x32xf32>
    %368 = math.tanh %367 : vector<8x32xf32>
    %369 = arith.mulf %364, %368 : vector<8x32xf32>
    %370 = arith.index_cast %349 : i32 to index
    %c0_112 = arith.constant 0 : index
    %371 = vector.load %arg15[%370, %c0_112] : memref<64x32xf32, #tpu.memory_space<vmem>>, vector<8x32xf32>
    tpu.vector_store %arg15[%370, %c0_112], %369 {strides = array<i32>} : memref<64x32xf32, #tpu.memory_space<vmem>>, vector<8x32xf32>,
    %c6_i32_113 = arith.constant 6 : i32
    %c8_i32_114 = arith.constant 8 : i32
    %372 = arith.muli %c6_i32_113, %c8_i32_114 : i32
    %373 = tpu.assume_multiple %372, 8 : i32
    %374 = arith.index_cast %373 : i32 to index
    %c0_115 = arith.constant 0 : index
    %375 = vector.load %arg14[%374, %c0_115] : memref<64x128xf32, #tpu.memory_space<vmem>>, vector<8x128xf32>
    %cst_116 = arith.constant dense<0.000000e+00> : vector<8x128xf32>
    %376 = tpu.matmul %369, %223, %cst_116 {dimension_numbers = #tpu.dot_dimension_numbers<[1], [0], [0], [1], [0, 0, 1, 1], [], []>} : vector<8x32xf32>, vector<32x128xf32>, vector<8x128xf32> -> vector<8x128xf32>
    %377 = arith.addf %375, %376 : vector<8x128xf32>
    %378 = arith.negf %377 : vector<8x128xf32>
    %379 = math.exp %378 : vector<8x128xf32>
    %cst_117 = arith.constant 1.000000e+00 : f32
    %380 = vector.broadcast %cst_117 : f32 to vector<8x128xf32>
    %381 = arith.addf %380, %379 : vector<8x128xf32>
    %382 = arith.divf %380, %381 : vector<8x128xf32>
    %383 = math.tanh %377 : vector<8x128xf32>
    %384 = arith.select %5, %383, %382 : vector<8x128xi1>, vector<8x128xf32>
    %385 = vector.extract_strided_slice %384 {offsets = [0, 0], sizes = [8, 32], strides = [1, 1]} : vector<8x128xf32> to vector<8x32xf32>
    %386 = vector.extract_strided_slice %384 {offsets = [0, 32], sizes = [8, 32], strides = [1, 1]} : vector<8x128xf32> to vector<8x32xf32>
    %387 = vector.extract_strided_slice %384 {offsets = [0, 64], sizes = [8, 32], strides = [1, 1]} : vector<8x128xf32> to vector<8x32xf32>
    %388 = vector.extract_strided_slice %384 {offsets = [0, 96], sizes = [8, 32], strides = [1, 1]} : vector<8x128xf32> to vector<8x32xf32>
    %389 = arith.mulf %386, %367 : vector<8x32xf32>
    %390 = arith.mulf %385, %387 : vector<8x32xf32>
    %391 = arith.addf %389, %390 : vector<8x32xf32>
    %392 = math.tanh %391 : vector<8x32xf32>
    %393 = arith.mulf %388, %392 : vector<8x32xf32>
    %394 = arith.index_cast %373 : i32 to index
    %c0_118 = arith.constant 0 : index
    %395 = vector.load %arg15[%394, %c0_118] : memref<64x32xf32, #tpu.memory_space<vmem>>, vector<8x32xf32>
    tpu.vector_store %arg15[%394, %c0_118], %393 {strides = array<i32>} : memref<64x32xf32, #tpu.memory_space<vmem>>, vector<8x32xf32>,
    %c7_i32_119 = arith.constant 7 : i32
    %c8_i32_120 = arith.constant 8 : i32
    %396 = arith.muli %c7_i32_119, %c8_i32_120 : i32
    %397 = tpu.assume_multiple %396, 8 : i32
    %398 = arith.index_cast %397 : i32 to index
    %c0_121 = arith.constant 0 : index
    %399 = vector.load %arg14[%398, %c0_121] : memref<64x128xf32, #tpu.memory_space<vmem>>, vector<8x128xf32>
    %cst_122 = arith.constant dense<0.000000e+00> : vector<8x128xf32>
    %400 = tpu.matmul %393, %223, %cst_122 {dimension_numbers = #tpu.dot_dimension_numbers<[1], [0], [0], [1], [0, 0, 1, 1], [], []>} : vector<8x32xf32>, vector<32x128xf32>, vector<8x128xf32> -> vector<8x128xf32>
    %401 = arith.addf %399, %400 : vector<8x128xf32>
    %402 = arith.negf %401 : vector<8x128xf32>
    %403 = math.exp %402 : vector<8x128xf32>
    %cst_123 = arith.constant 1.000000e+00 : f32
    %404 = vector.broadcast %cst_123 : f32 to vector<8x128xf32>
    %405 = arith.addf %404, %403 : vector<8x128xf32>
    %406 = arith.divf %404, %405 : vector<8x128xf32>
    %407 = math.tanh %401 : vector<8x128xf32>
    %408 = arith.select %5, %407, %406 : vector<8x128xi1>, vector<8x128xf32>
    %409 = vector.extract_strided_slice %408 {offsets = [0, 0], sizes = [8, 32], strides = [1, 1]} : vector<8x128xf32> to vector<8x32xf32>
    %410 = vector.extract_strided_slice %408 {offsets = [0, 32], sizes = [8, 32], strides = [1, 1]} : vector<8x128xf32> to vector<8x32xf32>
    %411 = vector.extract_strided_slice %408 {offsets = [0, 64], sizes = [8, 32], strides = [1, 1]} : vector<8x128xf32> to vector<8x32xf32>
    %412 = vector.extract_strided_slice %408 {offsets = [0, 96], sizes = [8, 32], strides = [1, 1]} : vector<8x128xf32> to vector<8x32xf32>
    %413 = arith.mulf %410, %391 : vector<8x32xf32>
    %414 = arith.mulf %409, %411 : vector<8x32xf32>
    %415 = arith.addf %413, %414 : vector<8x32xf32>
    %416 = math.tanh %415 : vector<8x32xf32>
    %417 = arith.mulf %412, %416 : vector<8x32xf32>
    %418 = arith.index_cast %397 : i32 to index
    %c0_124 = arith.constant 0 : index
    %419 = vector.load %arg15[%418, %c0_124] : memref<64x32xf32, #tpu.memory_space<vmem>>, vector<8x32xf32>
    tpu.vector_store %arg15[%418, %c0_124], %417 {strides = array<i32>} : memref<64x32xf32, #tpu.memory_space<vmem>>, vector<8x32xf32>,
    %c8_i32_125 = arith.constant 8 : i32
    %c1_126 = arith.constant 1 : index
    %c0_127 = arith.constant 0 : index
    %c0_128 = arith.constant 0 : index
    %420 = vector.load %arg12[%c1_126, %c0_127, %c0_128] : memref<2x8x32xf32, #tpu.memory_space<vmem>>, vector<1x8x32xf32>
    %421 = vector.shape_cast %420 : vector<1x8x32xf32> to vector<8x32xf32>
    %422 = vector.shape_cast %417 : vector<8x32xf32> to vector<1x8x32xf32>
    tpu.vector_store %arg12[%c1_126, %c0_127, %c0_128], %422 {strides = array<i32>} : memref<2x8x32xf32, #tpu.memory_space<vmem>>, vector<1x8x32xf32>,
    %c1_129 = arith.constant 1 : index
    %c0_130 = arith.constant 0 : index
    %c0_131 = arith.constant 0 : index
    %423 = vector.load %arg13[%c1_129, %c0_130, %c0_131] : memref<2x8x32xf32, #tpu.memory_space<vmem>>, vector<1x8x32xf32>
    %424 = vector.shape_cast %423 : vector<1x8x32xf32> to vector<8x32xf32>
    %425 = vector.shape_cast %415 : vector<8x32xf32> to vector<1x8x32xf32>
    tpu.vector_store %arg13[%c1_129, %c0_130, %c0_131], %425 {strides = array<i32>} : memref<2x8x32xf32, #tpu.memory_space<vmem>>, vector<1x8x32xf32>,
    %c0_132 = arith.constant 0 : index
    %c0_133 = arith.constant 0 : index
    %426 = vector.load %arg15[%c0_132, %c0_133] : memref<64x32xf32, #tpu.memory_space<vmem>>, vector<64x32xf32>
    %c0_134 = arith.constant 0 : index
    %c0_135 = arith.constant 0 : index
    %427 = vector.load %arg9[%c0_134, %c0_135] : memref<32x4xf32, #tpu.memory_space<vmem>>, vector<32x4xf32>
    %cst_136 = arith.constant dense<0.000000e+00> : vector<64x4xf32>
    %428 = tpu.matmul %426, %427, %cst_136 {dimension_numbers = #tpu.dot_dimension_numbers<[1], [0], [0], [1], [0, 0, 1, 1], [], []>} : vector<64x32xf32>, vector<32x4xf32>, vector<64x4xf32> -> vector<64x4xf32>
    %c0_137 = arith.constant 0 : index
    %c0_138 = arith.constant 0 : index
    %429 = vector.load %arg10[%c0_137, %c0_138] : memref<1x4xf32, #tpu.memory_space<vmem>>, vector<1x4xf32>
    %430 = vector.broadcast %429 : vector<1x4xf32> to vector<64x4xf32>
    %431 = arith.addf %428, %430 : vector<64x4xf32>
    %c0_139 = arith.constant 0 : index
    %c0_140 = arith.constant 0 : index
    %432 = vector.load %arg11[%c0_139, %c0_140] : memref<64x4xf32, #tpu.memory_space<vmem>>, vector<64x4xf32>
    tpu.vector_store %arg11[%c0_139, %c0_140], %431 {strides = array<i32>} : memref<64x4xf32, #tpu.memory_space<vmem>>, vector<64x4xf32>,
    return
  }
}

</mosaic_0001>

<bundles_post_ra>
// kernel: _forward_impl.1
= control target key start
LH: loop header
LB: loop body
LE: loop exit
PB: predicated region body
PF: predicated region fallthrough
CT: control target
= control target key end

     0   :  { %vm87_vm0 = vcmask 1043456   ;;  %vm62_vm1 = vcmask 31744   ;;  %v2900_v8 = vmov 0.0|0.0   ;;  %vm2901_vm2 = vmmov 0   ;;  %s2904_s17 = smov 32   ;;  %s3461_s3 = inlined_call_operand.vmem [shape: f32[4,128], index: 3, kind: input, shape index: {}]   ;;  %s3462_s0 = inlined_call_operand.vmem [shape: f32[64,4], index: 0, kind: input, shape index: {}]   ;;  %s3463_s4 = inlined_call_operand.vmem [shape: f32[32,128], index: 4, kind: input, shape index: {}]   ;;  %s3464_s1 = inlined_call_operand.vmem [shape: f32[2,8,32], index: 1, kind: input, shape index: {}, may-alias: {1,12}]   ;;  %s3465_s5 = inlined_call_operand.vmem [shape: f32[1,128], index: 5, kind: input, shape index: {}]   ;;  %s3466_s2 = inlined_call_operand.vmem [shape: f32[2,8,32], index: 2, kind: input, shape index: {}, may-alias: {2,13}]   ;;  %s3467_s6 = inlined_call_operand.vmem [shape: f32[32,128], index: 6, kind: input, shape index: {}]   ;;  %s3468_s7 = inlined_call_operand.vmem [shape: f32[32,128], index: 7, kind: input, shape index: {}]   ;;  %s3469_s8 = inlined_call_operand.vmem [shape: f32[1,128], index: 8, kind: input, shape index: {}]   ;;  %s3470_s12 = inlined_call_operand.vmem [shape: f32[2,8,32], index: 12, kind: output, shape index: {1}, may-alias: {1,12}]   ;;  %s3471_s9 = inlined_call_operand.vmem [shape: f32[32,4], index: 9, kind: input, shape index: {}]   ;;  %s3472_s10 = inlined_call_operand.vmem [shape: f32[1,4], index: 10, kind: input, shape index: {}]   ;;  %s3473_s11 = inlined_call_operand.vmem [shape: f32[64,4], index: 11, kind: output, shape index: {0}]   ;;  %s3474_s13 = inlined_call_operand.vmem [shape: f32[2,8,32], index: 13, kind: output, shape index: {2}, may-alias: {2,13}]  }
   0x1   :  { %v54_v0 = vld [vmem:[%s3461_s3] sm:$0xf]  ;;  %v51_v2 = vld [vmem:[%s3462_s0 + $0x28] sm:$0xff]  ;;  %v52_v5 = vld [vmem:[%s3462_s0 + $0x30] sm:$0xff]  ;;  %v2902_v14 = vmov 0.0   ;;  %vm211_vm3 = vcmask 261120   ;;  %v41_v29 = vlaneseq }
   0x2   :  { %v50_v1 = vld [vmem:[%s3462_s0 + $0x20] sm:$0xff]  ;;  %2764 = vmatprep.subr.msk.mxu1 %vm87_vm0, %v54_v0  ;;  %v205_v4 = vld [vmem:[%s3463_s4 + $0x8] sm:$0xff]  ;;  %2422 = vmatprep.subr.msk.mxu0 %vm87_vm0, %v54_v0  ;;  %v206_v10 = vld [vmem:[%s3463_s4 + $0x10] sm:$0xff] }
   0x3   :  { %2430 = vmatprep.mubr.msk.f32.mxu1 %vm62_vm1, %v50_v1  ;;  %v204_v3 = vld [vmem:[%s3463_s4] sm:$0xff]  ;;  %2765 = vmatpush3.msk.msra.mxu1 %vm87_vm0, %v54_v0  ;;  %v47_v9 = vld [vmem:[%s3462_s0 + $0x8] sm:$0xff]  ;;  %v207_v11 = vld [vmem:[%s3463_s4 + $0x18] sm:$0xff]  ;;  %v42_v31 = vand.u32 127, %v41_v29 }
   0x4   :  { %v2997_v6 = vpack.c.bf16 %v205_v4, %v204_v3  ;;  %v46_v7 = vld [vmem:[%s3462_s0] sm:$0xff]  ;;  %2431 = vmatmul.mubr.msk.f32.vlgmr.msra.gmra.mrb[0].mxu1 %vm62_vm1, %v51_v2  ;;  %2652 = vmatprep.subr.bf16.mxu1 %v2900_v8  ;;  %v53_v12 = vld [vmem:[%s3462_s0 + $0x38] sm:$0xff]  ;;  %v3019_v13 = vpack.c.bf16 %v207_v11, %v206_v10  ;;  %v48_v62 = vld [vmem:[%s3462_s0 + $0x10] sm:$0xff] }
   0x5   :  { %2433 = vmatprep.mubr.msk.f32.mxu1 %vm62_vm1, %v52_v5  ;;  %2423 = vmatpush3.msk.msra.mxu0 %vm87_vm0, %v54_v0  ;;  %v208_v15 = vld [vmem:[%s3464_s1] sm:$0xff]  ;;  %vm43_vm4 = vcmp.ge.s32.totalorder %v42_v31, 64  ;;  %vm44_vm5 = vcmp.lt.s32.totalorder %v42_v31, 96  ;;  %v49_v63 = vld [vmem:[%s3462_s0 + $0x18] sm:$0xff] }
   0x6   :  { %2654 = vmatpush3.bf16.msra.mxu1 %v2997_v6  ;;  %2424 = vmatprep.mubr.msk.f32.mxu0 %vm62_vm1, %v46_v7  ;;  %v3052_v19 = vld [vmem:[%s3465_s5] ss:$0 sm:$0xff]  ;;  %vm3059_vm6 = vmand %vm43_vm4, %vm44_vm5  ;;  %s2903_s5 = smov 64  }
   0x7   :  { %2655 = vmatprep.subr.bf16.mxu1 %v2900_v8  ;;  %2425 = vmatmul.mubr.msk.f32.vlgmr.msra.gmra.mrb[0].mxu0 %vm62_vm1, %v47_v9  ;;  %v209_v36 = vld [vmem:[%s3466_s2] sm:$0xff] }
   0x8   :  { %2434 = vmatmul.mubr.msk.f32.gmra.mrb[2].mxu1 %vm62_vm1, %v53_v12  ;;  %2664 = vmatprep.subr.bf16.mxu0 %v2900_v8 }
   0x9   :  { %2444 = vmatprep.mubr.msk.f32.mxu1 %vm2901_vm2, %v2902_v14  ;;  %2666 = vmatpush3.bf16.msra.mxu0 %v2997_v6 }
   0xa   :  { %2657 = vmatpush3.bf16.msra.mxu1 %v3019_v13  ;;  %2667 = vmatprep.subr.bf16.mxu0 %v2900_v8 }
   0xb   :  { %2658 = vmatprep.subr.bf16.mxu1 %v2900_v8  ;;  %2427 = vmatprep.mubr.msk.f32.mxu0 %vm62_vm1, %v48_v62 }
   0xc   :  { %2428 = vmatmul.mubr.msk.f32.gmra.mrb[2].mxu0 %vm62_vm1, %v49_v63 }
   0xd   :  { %2445 = vmatmul.mubr.msk.f32.vlgmr.msra.gmra.mrb[4].mxu1 %vm211_vm3, %v208_v15  ;;  %2669 = vmatpush3.bf16.msra.mxu0 %v3019_v13 }
   0xe   :  { %2660 = vmatpush3.bf16.msra.mxu1 %v2997_v6  ;;  %2455 = vmatprep.mubr.msk.f32.mxu1 %vm2901_vm2, %v2902_v14 }
   0xf   :  { %2661 = vmatprep.subr.bf16.mxu1 %v2900_v8  ;;  %2676 = vmatprep.subr.bf16.mxu0 %v2900_v8 }
  0x10   :  { %2466 = vmatprep.mubr.msk.f32.mxu0 %vm2901_vm2, %v2902_v14 }
  0x12   :  { %2663 = vmatpush3.bf16.msra.mxu1 %v3019_v13 }
  0x13   :  { %2670 = vmatprep.subr.bf16.mxu1 %v2900_v8 }
  0xd7   :  { %v3045_v16 = vpop.f32.mrb[0].mxu1 }
  0xd8   :  { %v3047_v17 = vpop.f32.mrb[1].mxu1 }
  0xda   :  { %v2426_v18 = vpop.f32.mrb[0].mxu0 }
  0xdb   :  { %v3054_v20 = vpop.f32.mrb[2].mxu1  ;;  %v157_v21 = vpop.f32.mrb[1].mxu0  ;;  %v163_v47 = vadd.f32 %v2426_v18, %v3052_v19 }
  0xdc   :  { %v3056_v22 = vpop.f32.mrb[3].mxu1  ;;  %v158_v23 = vadd.f32 %v3052_v19, %v157_v21 }
  0xdf   :  { %v2429_v3 = vpop.f32.mrb[2].mxu0 }
  0xe0   :  { %v281_v24 = vpop.f32.mrb[4].mxu1  ;;  %v167_v4 = vpop.f32.mrb[3].mxu0 }
  0xe1   :  { %v285_v25 = vadd.f32 %v281_v24, %v158_v23  ;;  %v2446_v26 = vpop.f32.mrb[5].mxu1  ;;  %v168_v7 = vadd.f32 %v3052_v19, %v167_v4 }
  0xe3   :  { %v2256_v27 = vmul.f32 -1.442695, %v285_v25 }
  0xe5   :  { %2772 = vpow2.f32 %v2256_v27 }
  0xe6   :  { %2774 = vtanh.f32 %v285_v25 }
  0xef   :  { %v2773_v28 = vpop.eup %2772 }
  0xf0   :  { %v289_v30 = vadd.f32 1.0, %v2773_v28  ;;  %v2775_v33 = vpop.eup %2774 }
  0xf2   :  { %2776 = vrcp.f32 %v289_v30 }
  0xfc   :  { %v2777_v34 = vpop.eup %2776 }
  0xfd   :  { %v293_v35 = vsel %vm3059_vm6, %v2775_v33, %v2777_v34 }
  0xfe   :  { %300 = vrot.lane.b32.xlu0 %v293_v35, %s2903_s5 }
 0x102   :  { %295 = vrot.lane.b32.xlu0 %v209_v36, %s2904_s17 }
 0x170   :  { %v301_v37 = vpop.permute.xlu0 %300 }
 0x171   :  { %v303_v38 = vmul.f32 %v301_v37, %v293_v35 }
 0x173   :  { %305 = vrot.lane.b32.xlu1 %v303_v38, %s2904_s17 }
 0x174   :  { %v296_v39 = vpop.permute.xlu0 %295 }
 0x175   :  { %v298_v40 = vmul.f32 %v296_v39, %v293_v35 }
 0x1e5   :  { %v306_v41 = vpop.permute.xlu1 %305 }
 0x1e6   :  { %v308_v42 = vadd.f32 %v306_v41, %v298_v40 }
 0x1e8   :  { %2778 = vtanh.f32 %v308_v42 }
 0x1f2   :  { %v2779_v43 = vpop.eup %2778 }
 0x1f3   :  { %311 = vrot.lane.b32.xlu1 %v2779_v43, %s2903_s5 }
 0x265   :  { %v312_v44 = vpop.permute.xlu1 %311 }
 0x266   :  { %v314_v45 = vmul.f32 %v312_v44, %v293_v35  ;;  %v173_v35 = vadd.f32 %v2429_v3, %v3052_v19 }
 0x268   :  { %316 = vrot.lane.b32.xlu0 %v314_v45, %s2904_s17 }
 0x2da   :  { %v317_v46 = vpop.permute.xlu0 %316 }
 0x2db   :  { %319 = vst.msk [vmem:[#allocation3] sm:$0xff] %vm211_vm3, %v317_v46  ;;  %2456 = vmatmul.mubr.msk.f32.vlgmr.msra.gmra.mrb[6].mxu1 %vm211_vm3, %v317_v46 }
 0x2dc   :  { %2672 = vmatpush3.bf16.msra.mxu1 %v2997_v6  ;;  %2477 = vmatprep.mubr.msk.f32.mxu1 %vm2901_vm2, %v2902_v14 }
 0x2dd   :  { %2673 = vmatprep.subr.bf16.mxu1 %v2900_v8 }
 0x2e0   :  { %2675 = vmatpush3.bf16.msra.mxu1 %v3019_v13 }
 0x2e1   :  { %2682 = vmatprep.subr.bf16.mxu1 %v2900_v8 }
 0x3ae   :  { %v390_v48 = vpop.f32.mrb[6].mxu1 }
 0x3af   :  { %v394_v49 = vadd.f32 %v390_v48, %v163_v47  ;;  %v2457_v50 = vpop.f32.mrb[7].mxu1 }
 0x3b1   :  { %v2258_v51 = vmul.f32 -1.442695, %v394_v49 }
 0x3b3   :  { %2780 = vpow2.f32 %v2258_v51 }
 0x3b4   :  { %2782 = vtanh.f32 %v394_v49 }
 0x3bd   :  { %v2781_v52 = vpop.eup %2780 }
 0x3be   :  { %v398_v53 = vadd.f32 1.0, %v2781_v52  ;;  %v2783_v54 = vpop.eup %2782 }
 0x3c0   :  { %2784 = vrcp.f32 %v398_v53 }
 0x3ca   :  { %v2785_v55 = vpop.eup %2784 }
 0x3cb   :  { %v402_v56 = vsel %vm3059_vm6, %v2783_v54, %v2785_v55  ;;  %v178_v54 = vadd.f32 %v3052_v19, %v3047_v17 }
 0x3cc   :  { %405 = vrot.lane.b32.xlu1 %v402_v56, %s2903_s5  ;;  %v403_v59 = vmul.f32 %v402_v56, %v308_v42 }
 0x43e   :  { %v406_v57 = vpop.permute.xlu1 %405 }
 0x43f   :  { %v408_v58 = vmul.f32 %v406_v57, %v402_v56 }
 0x441   :  { %410 = vrot.lane.b32.xlu0 %v408_v58, %s2904_s17 }
 0x4b3   :  { %v411_v60 = vpop.permute.xlu0 %410 }
 0x4b4   :  { %v413_v61 = vadd.f32 %v411_v60, %v403_v59 }
 0x4b6   :  { %2786 = vtanh.f32 %v413_v61 }
 0x4c0   :  { %v2787_v0 = vpop.eup %2786 }
 0x4c1   :  { %416 = vrot.lane.b32.xlu1 %v2787_v0, %s2903_s5 }
 0x533   :  { %v417_v1 = vpop.permute.xlu1 %416 }
 0x534   :  { %v419_v2 = vmul.f32 %v417_v1, %v402_v56 }
 0x536   :  { %421 = vrot.lane.b32.xlu0 %v419_v2, %s2904_s17 }
 0x5a8   :  { %v422_v5 = vpop.permute.xlu0 %421 }
 0x5a9   :  { %425 = vst.msk [vmem:[#allocation3 + $0x8] sm:$0xff] %vm211_vm3, %v422_v5  ;;  %2467 = vmatmul.mubr.msk.f32.vlgmr.msra.gmra.mrb[4].mxu0 %vm211_vm3, %v422_v5 }
 0x5aa   :  { %2678 = vmatpush3.bf16.msra.mxu0 %v2997_v6  ;;  %2488 = vmatprep.mubr.msk.f32.mxu0 %vm2901_vm2, %v2902_v14 }
 0x5ab   :  { %2679 = vmatprep.subr.bf16.mxu0 %v2900_v8 }
 0x5ae   :  { %2681 = vmatpush3.bf16.msra.mxu0 %v3019_v13 }
 0x5af   :  { %2688 = vmatprep.subr.bf16.mxu0 %v2900_v8 }
 0x67c   :  { %v496_v9 = vpop.f32.mrb[4].mxu0 }
 0x67d   :  { %v500_v10 = vadd.f32 %v496_v9, %v168_v7  ;;  %v2468_v11 = vpop.f32.mrb[5].mxu0 }
 0x67f   :  { %v2260_v12 = vmul.f32 -1.442695, %v500_v10 }
 0x681   :  { %2788 = vpow2.f32 %v2260_v12 }
 0x682   :  { %2790 = vtanh.f32 %v500_v10  ;;  %v183_v10 = vadd.f32 %v3045_v16, %v3052_v19 }
 0x68b   :  { %v2789_v15 = vpop.eup %2788 }
 0x68c   :  { %v504_v18 = vadd.f32 1.0, %v2789_v15  ;;  %v2791_v21 = vpop.eup %2790 }
 0x68e   :  { %2792 = vrcp.f32 %v504_v18 }
 0x698   :  { %v2793_v23 = vpop.eup %2792 }
 0x699   :  { %v508_v24 = vsel %vm3059_vm6, %v2791_v21, %v2793_v23 }
 0x69a   :  { %511 = vrot.lane.b32.xlu1 %v508_v24, %s2903_s5  ;;  %v509_v27 = vmul.f32 %v508_v24, %v413_v61 }
 0x70c   :  { %v512_v25 = vpop.permute.xlu1 %511 }
 0x70d   :  { %v514_v26 = vmul.f32 %v512_v25, %v508_v24 }
 0x70f   :  { %516 = vrot.lane.b32.xlu0 %v514_v26, %s2904_s17 }
 0x781   :  { %v517_v28 = vpop.permute.xlu0 %516 }
 0x782   :  { %v519_v29 = vadd.f32 %v517_v28, %v509_v27 }
 0x784   :  { %2794 = vtanh.f32 %v519_v29 }
 0x78e   :  { %v2795_v30 = vpop.eup %2794 }
 0x78f   :  { %522 = vrot.lane.b32.xlu1 %v2795_v30, %s2903_s5  ;;  %v1077_v30 = vld [vmem:[%s3467_s6 + $0x8] sm:$0xff] }
 0x801   :  { %v523_v31 = vpop.permute.xlu1 %522 }
 0x802   :  { %v525_v33 = vmul.f32 %v523_v31, %v508_v24 }
 0x804   :  { %527 = vrot.lane.b32.xlu0 %v525_v33, %s2904_s17 }
 0x876   :  { %v528_v34 = vpop.permute.xlu0 %527 }
 0x877   :  { %531 = vst.msk [vmem:[#allocation3 + $0x10] sm:$0xff] %vm211_vm3, %v528_v34  ;;  %2478 = vmatmul.mubr.msk.f32.vlgmr.msra.gmra.mrb[8].mxu1 %vm211_vm3, %v528_v34 }
 0x878   :  { %2684 = vmatpush3.bf16.msra.mxu1 %v2997_v6  ;;  %2499 = vmatprep.mubr.msk.f32.mxu1 %vm2901_vm2, %v2902_v14 }
 0x879   :  { %2685 = vmatprep.subr.bf16.mxu1 %v2900_v8 }
 0x87c   :  { %2687 = vmatpush3.bf16.msra.mxu1 %v3019_v13 }
 0x87d   :  { %2694 = vmatprep.subr.bf16.mxu1 %v2900_v8 }
 0x94a   :  { %v602_v36 = vpop.f32.mrb[8].mxu1 }
 0x94b   :  { %v606_v37 = vadd.f32 %v602_v36, %v173_v35  ;;  %v2479_v38 = vpop.f32.mrb[9].mxu1  ;;  %v1078_v36 = vld [vmem:[%s3467_s6 + $0x10] sm:$0xff] }
 0x94d   :  { %v2262_v39 = vmul.f32 -1.442695, %v606_v37 }
 0x94f   :  { %2796 = vpow2.f32 %v2262_v39 }
 0x950   :  { %2798 = vtanh.f32 %v606_v37  ;;  %v1079_v37 = vld [vmem:[%s3467_s6 + $0x18] sm:$0xff] }
 0x951   :  { %v2704_v38 = vpack.c.bf16 %v1079_v37, %v1078_v36 }
 0x959   :  { %v2797_v40 = vpop.eup %2796 }
 0x95a   :  { %v610_v41 = vadd.f32 1.0, %v2797_v40  ;;  %v2799_v42 = vpop.eup %2798  ;;  %v1068_v40 = vld [vmem:[#allocation3] sm:$0xff] }
 0x95c   :  { %2800 = vrcp.f32 %v610_v41  ;;  %v1069_v41 = vld [vmem:[#allocation3 + $0x8] sm:$0xff] }
 0x966   :  { %v2801_v43 = vpop.eup %2800 }
 0x967   :  { %v614_v44 = vsel %vm3059_vm6, %v2799_v42, %v2801_v43  ;;  %v1070_v42 = vld [vmem:[#allocation3 + $0x10] sm:$0xff] }
 0x968   :  { %617 = vrot.lane.b32.xlu1 %v614_v44, %s2903_s5  ;;  %v615_v47 = vmul.f32 %v614_v44, %v519_v29  ;;  %v1076_v29 = vld [vmem:[%s3467_s6] sm:$0xff] }
 0x969   :  { %v2700_v31 = vpack.c.bf16 %v1077_v30, %v1076_v29 }
 0x9da   :  { %v618_v45 = vpop.permute.xlu1 %617 }
 0x9db   :  { %v620_v46 = vmul.f32 %v618_v45, %v614_v44 }
 0x9dd   :  { %622 = vrot.lane.b32.xlu0 %v620_v46, %s2904_s17  ;;  %v188_v46 = vadd.f32 %v3052_v19, %v3056_v22 }
 0xa4f   :  { %v623_v48 = vpop.permute.xlu0 %622 }
 0xa50   :  { %v625_v49 = vadd.f32 %v623_v48, %v615_v47 }
 0xa52   :  { %2802 = vtanh.f32 %v625_v49 }
 0xa5c   :  { %v2803_v50 = vpop.eup %2802 }
 0xa5d   :  { %628 = vrot.lane.b32.xlu1 %v2803_v50, %s2903_s5 }
 0xacf   :  { %v629_v51 = vpop.permute.xlu1 %628 }
 0xad0   :  { %v631_v52 = vmul.f32 %v629_v51, %v614_v44 }
 0xad2   :  { %633 = vrot.lane.b32.xlu0 %v631_v52, %s2904_s17 }
 0xb44   :  { %v634_v53 = vpop.permute.xlu0 %633 }
 0xb45   :  { %637 = vst.msk [vmem:[#allocation3 + $0x18] sm:$0xff] %vm211_vm3, %v634_v53  ;;  %2489 = vmatmul.mubr.msk.f32.vlgmr.msra.gmra.mrb[6].mxu0 %vm211_vm3, %v634_v53 }
 0xb46   :  { %2690 = vmatpush3.bf16.msra.mxu0 %v2997_v6  ;;  %2510 = vmatprep.mubr.msk.f32.mxu0 %vm2901_vm2, %v2902_v14 }
 0xb47   :  { %2691 = vmatprep.subr.bf16.mxu0 %v2900_v8 }
 0xb4a   :  { %2693 = vmatpush3.bf16.msra.mxu0 %v3019_v13 }
 0xb4b   :  { %2701 = vmatprep.subr.bf16.mxu0 %v2700_v31 }
 0xb4c   :  { %v1071_v43 = vld [vmem:[#allocation3 + $0x18] sm:$0xff] }
 0xc18   :  { %v708_v55 = vpop.f32.mrb[6].mxu0 }
 0xc19   :  { %v712_v56 = vadd.f32 %v708_v55, %v178_v54  ;;  %v2490_v57 = vpop.f32.mrb[7].mxu0 }
 0xc1b   :  { %v2264_v58 = vmul.f32 -1.442695, %v712_v56 }
 0xc1d   :  { %2804 = vpow2.f32 %v2264_v58 }
 0xc1e   :  { %2806 = vtanh.f32 %v712_v56 }
 0xc27   :  { %v2805_v59 = vpop.eup %2804 }
 0xc28   :  { %v716_v60 = vadd.f32 1.0, %v2805_v59  ;;  %v2807_v61 = vpop.eup %2806 }
 0xc2a   :  { %2808 = vrcp.f32 %v716_v60 }
 0xc34   :  { %v2809_v62 = vpop.eup %2808 }
 0xc35   :  { %v720_v63 = vsel %vm3059_vm6, %v2807_v61, %v2809_v62 }
 0xc36   :  { %723 = vrot.lane.b32.xlu1 %v720_v63, %s2903_s5  ;;  %v721_v17 = vmul.f32 %v720_v63, %v625_v49 }
 0xca8   :  { %v724_v0 = vpop.permute.xlu1 %723 }
 0xca9   :  { %v726_v1 = vmul.f32 %v724_v0, %v720_v63 }
 0xcab   :  { %728 = vrot.lane.b32.xlu0 %v726_v1, %s2904_s17 }
 0xd1d   :  { %v729_v2 = vpop.permute.xlu0 %728 }
 0xd1e   :  { %v731_v3 = vadd.f32 %v729_v2, %v721_v17  ;;  %v1224_v2 = vld [vmem:[%s3468_s7] sm:$0xff] }
 0xd20   :  { %2810 = vtanh.f32 %v731_v3 }
 0xd2a   :  { %v2811_v4 = vpop.eup %2810 }
 0xd2b   :  { %734 = vrot.lane.b32.xlu1 %v2811_v4, %s2903_s5 }
 0xd9d   :  { %v735_v5 = vpop.permute.xlu1 %734 }
 0xd9e   :  { %v737_v7 = vmul.f32 %v735_v5, %v720_v63  ;;  %v1226_v5 = vld [vmem:[%s3468_s7 + $0x10] sm:$0xff] }
 0xda0   :  { %739 = vrot.lane.b32.xlu0 %v737_v7, %s2904_s17  ;;  %v1227_v7 = vld [vmem:[%s3468_s7 + $0x18] sm:$0xff] }
 0xe12   :  { %v740_v9 = vpop.permute.xlu0 %739 }
 0xe13   :  { %743 = vst.msk [vmem:[#allocation3 + $0x20] sm:$0xff] %vm211_vm3, %v740_v9  ;;  %2500 = vmatmul.mubr.msk.f32.vlgmr.msra.gmra.mrb[10].mxu1 %vm211_vm3, %v740_v9  ;;  %v3216_v9 = vpack.c.bf16 %v1227_v7, %v1226_v5 }
 0xe14   :  { %2696 = vmatpush3.bf16.msra.mxu1 %v2997_v6  ;;  %2521 = vmatprep.mubr.msk.f32.mxu1 %vm2901_vm2, %v2902_v14 }
 0xe15   :  { %2697 = vmatprep.subr.bf16.mxu1 %v2900_v8 }
 0xe18   :  { %2699 = vmatpush3.bf16.msra.mxu1 %v3019_v13 }
 0xe19   :  { %2708 = vmatprep.subr.bf16.mxu1 %v2900_v8 }
 0xe1a   :  { %v1072_v44 = vld [vmem:[#allocation3 + $0x20] sm:$0xff] }
 0xee6   :  { %v814_v11 = vpop.f32.mrb[10].mxu1 }
 0xee7   :  { %v818_v12 = vadd.f32 %v814_v11, %v183_v10  ;;  %v2501_v15 = vpop.f32.mrb[11].mxu1 }
 0xee9   :  { %v2266_v18 = vmul.f32 -1.442695, %v818_v12 }
 0xeeb   :  { %2812 = vpow2.f32 %v2266_v18  ;;  %v2280_v18 = vld [vmem:[%s3464_s1 + $0x8] sm:$0xff]  ;;  %s2905_s1 = smov 96  }
 0xeec   :  { %2814 = vtanh.f32 %v818_v12  ;;  %v2281_v12 = vld [vmem:[%s3466_s2 + $0x8] sm:$0xff] }
 0xef5   :  { %v2813_v21 = vpop.eup %2812 }
 0xef6   :  { %v822_v23 = vadd.f32 1.0, %v2813_v21  ;;  %v2815_v6 = vpop.eup %2814 }
 0xef8   :  { %2816 = vrcp.f32 %v822_v23  ;;  %v193_v23 = vadd.f32 %v3054_v20, %v3052_v19 }
 0xf02   :  { %v2817_v24 = vpop.eup %2816 }
 0xf03   :  { %v826_v25 = vsel %vm3059_vm6, %v2815_v6, %v2817_v24 }
 0xf04   :  { %829 = vrot.lane.b32.xlu1 %v826_v25, %s2903_s5  ;;  %v827_v16 = vmul.f32 %v826_v25, %v731_v3  ;;  %v1225_v3 = vld [vmem:[%s3468_s7 + $0x8] sm:$0xff] }
 0xf05   :  { %v3206_v4 = vpack.c.bf16 %v1225_v3, %v1224_v2 }
 0xf76   :  { %v830_v13 = vpop.permute.xlu1 %829 }
 0xf77   :  { %v832_v26 = vmul.f32 %v830_v13, %v826_v25  ;;  %v3249_v13 = vld [vmem:[%s3469_s8] ss:$0 sm:$0xff] }
 0xf79   :  { %834 = vrot.lane.b32.xlu0 %v832_v26, %s2904_s17 }
 0xfeb   :  { %v835_v27 = vpop.permute.xlu0 %834 }
 0xfec   :  { %v837_v28 = vadd.f32 %v835_v27, %v827_v16 }
 0xfee   :  { %2818 = vtanh.f32 %v837_v28 }
 0xff8   :  { %v2819_v33 = vpop.eup %2818 }
 0xff9   :  { %840 = vrot.lane.b32.xlu1 %v2819_v33, %s2903_s5 }
0x106b   :  { %v841_v34 = vpop.permute.xlu1 %840 }
0x106c   :  { %v843_v35 = vmul.f32 %v841_v34, %v826_v25 }
0x106e   :  { %845 = vrot.lane.b32.xlu0 %v843_v35, %s2904_s17 }
0x10e0   :  { %v846_v39 = vpop.permute.xlu0 %845 }
0x10e1   :  { %849 = vst.msk [vmem:[#allocation3 + $0x28] sm:$0xff] %vm211_vm3, %v846_v39  ;;  %2511 = vmatmul.mubr.msk.f32.vlgmr.msra.gmra.mrb[8].mxu0 %vm211_vm3, %v846_v39 }
0x10e2   :  { %2703 = vmatpush3.bf16.msra.mxu0 %v2700_v31  ;;  %2532 = vmatprep.mubr.msk.f32.mxu0 %vm211_vm3, %v1068_v40 }
0x10e3   :  { %2705 = vmatprep.subr.bf16.mxu0 %v2704_v38 }
0x10e6   :  { %2707 = vmatpush3.bf16.msra.mxu0 %v2704_v38 }
0x10e7   :  { %2720 = vmatprep.subr.bf16.mxu0 %v2900_v8 }
0x10e8   :  { %v1073_v45 = vld [vmem:[#allocation3 + $0x28] sm:$0xff] }
0x10e9   :  { %2533 = vmatmul.mubr.msk.f32.vlgmr.msra.gmra.mrb[10].mxu0 %vm211_vm3, %v1069_v41 }
0x10ea   :  { %2535 = vmatprep.mubr.msk.f32.mxu0 %vm211_vm3, %v1070_v42  ;;  %2722 = vmatpush3.bf16.msra.mxu0 %v3206_v4 }
0x10eb   :  { %2723 = vmatprep.subr.bf16.mxu0 %v2900_v8 }
0x10ed   :  { %2536 = vmatmul.mubr.msk.f32.gmra.mrb[12].mxu0 %vm211_vm3, %v1071_v43 }
0x10ee   :  { %2538 = vmatprep.mubr.msk.f32.mxu0 %vm211_vm3, %v1072_v44  ;;  %2725 = vmatpush3.bf16.msra.mxu0 %v3216_v9 }
0x10ef   :  { %2732 = vmatprep.subr.bf16.mxu0 %v2900_v8 }
0x10f1   :  { %2539 = vmatmul.mubr.msk.f32.gmra.mrb[14].mxu0 %vm211_vm3, %v1073_v45 }
0x11b4   :  { %v920_v47 = vpop.f32.mrb[8].mxu0 }
0x11b5   :  { %v924_v48 = vadd.f32 %v920_v47, %v188_v46  ;;  %v2512_v49 = vpop.f32.mrb[9].mxu0 }
0x11b7   :  { %v2268_v50 = vmul.f32 -1.442695, %v924_v48 }
0x11b9   :  { %2820 = vpow2.f32 %v2268_v50 }
0x11ba   :  { %2822 = vtanh.f32 %v924_v48 }
0x11bc   :  { %v3182_v51 = vpop.f32.mrb[10].mxu0 }
0x11bd   :  { %v1177_v52 = vpop.f32.mrb[11].mxu0 }
0x11be   :  { %v1178_v26 = vadd.f32 %v3249_v13, %v1177_v52 }
0x11c0   :  { %v3184_v53 = vpop.f32.mrb[12].mxu0 }
0x11c1   :  { %v3186_v54 = vpop.f32.mrb[13].mxu0 }
0x11c3   :  { %v2821_v55 = vpop.eup %2820 }
0x11c4   :  { %v928_v56 = vadd.f32 1.0, %v2821_v55  ;;  %v3188_v57 = vpop.f32.mrb[14].mxu0  ;;  %v2823_v22 = vpop.eup %2822 }
0x11c5   :  { %v3190_v58 = vpop.f32.mrb[15].mxu0 }
0x11c6   :  { %2824 = vrcp.f32 %v928_v56 }
0x11d0   :  { %v2825_v59 = vpop.eup %2824 }
0x11d1   :  { %v932_v60 = vsel %vm3059_vm6, %v2823_v22, %v2825_v59 }
0x11d2   :  { %935 = vrot.lane.b32.xlu1 %v932_v60, %s2903_s5  ;;  %v933_v63 = vmul.f32 %v932_v60, %v837_v28 }
0x1244   :  { %v936_v61 = vpop.permute.xlu1 %935 }
0x1245   :  { %v938_v62 = vmul.f32 %v936_v61, %v932_v60 }
0x1247   :  { %940 = vrot.lane.b32.xlu0 %v938_v62, %s2904_s17  ;;  %v1183_v62 = vadd.f32 %v3182_v51, %v3249_v13 }
0x12b9   :  { %v941_v0 = vpop.permute.xlu0 %940 }
0x12ba   :  { %v3196_v1 = vadd.f32 %v941_v0, %v933_v63 }
0x12bc   :  { %2826 = vtanh.f32 %v3196_v1 }
0x12c6   :  { %v2827_v17 = vpop.eup %2826 }
0x12c7   :  { %946 = vrot.lane.b32.xlu1 %v2827_v17, %s2903_s5 }
0x1339   :  { %v947_v10 = vpop.permute.xlu1 %946 }
0x133a   :  { %v949_v11 = vmul.f32 %v947_v10, %v932_v60 }
0x133c   :  { %951 = vrot.lane.b32.xlu0 %v949_v11, %s2904_s17 }
0x1340   :  { %1316 = vrot.lane.b32.xlu0 %v2281_v12, %s2904_s17 }
0x13ae   :  { %v952_v15 = vpop.permute.xlu0 %951 }
0x13af   :  { %955 = vst.msk [vmem:[#allocation3 + $0x30] sm:$0xff] %vm211_vm3, %v952_v15  ;;  %2522 = vmatmul.mubr.msk.f32.vlgmr.msra.gmra.mrb[12].mxu1 %vm211_vm3, %v952_v15 }
0x13b0   :  { %2710 = vmatpush3.bf16.msra.mxu1 %v3206_v4  ;;  %2552 = vmatprep.mubr.msk.f32.mxu1 %vm2901_vm2, %v2902_v14 }
0x13b1   :  { %2711 = vmatprep.subr.bf16.mxu1 %v2900_v8 }
0x13b2   :  { %v1317_v37 = vpop.permute.xlu0 %1316 }
0x13b4   :  { %2713 = vmatpush3.bf16.msra.mxu1 %v3216_v9 }
0x13b5   :  { %2714 = vmatprep.subr.bf16.mxu1 %v2900_v8 }
0x13b6   :  { %v1074_v21 = vld [vmem:[#allocation3 + $0x30] sm:$0xff] }
0x13b7   :  { %2553 = vmatmul.mubr.msk.f32.vlgmr.msra.gmra.mrb[14].mxu1 %vm211_vm3, %v2280_v18  ;;  %2541 = vmatprep.mubr.msk.f32.mxu0 %vm211_vm3, %v1074_v21 }
0x13b8   :  { %2716 = vmatpush3.bf16.msra.mxu1 %v3206_v4  ;;  %2563 = vmatprep.mubr.msk.f32.mxu1 %vm2901_vm2, %v2902_v14 }
0x13b9   :  { %2717 = vmatprep.subr.bf16.mxu1 %v2900_v8 }
0x13bc   :  { %2719 = vmatpush3.bf16.msra.mxu1 %v3216_v9 }
0x13bd   :  { %2726 = vmatprep.subr.bf16.mxu1 %v2900_v8 }
0x1482   :  { %v1026_v6 = vpop.f32.mrb[12].mxu1 }
0x1483   :  { %v1030_v24 = vadd.f32 %v1026_v6, %v193_v23  ;;  %v2523_v25 = vpop.f32.mrb[13].mxu1 }
0x1485   :  { %v2270_v36 = vmul.f32 -1.442695, %v1030_v24 }
0x148a   :  { %v1302_v16 = vpop.f32.mrb[14].mxu1 }
0x148b   :  { %v1306_v27 = vadd.f32 %v1302_v16, %v1178_v26  ;;  %v2554_v28 = vpop.f32.mrb[15].mxu1 }
0x148c   :  { %v1188_v28 = vadd.f32 %v3249_v13, %v3186_v54 }
0x148d   :  { %v2283_v29 = vmul.f32 -1.442695, %v1306_v27 }
0x148f   :  { %2828 = vpow2.f32 %v2283_v29 }
0x1490   :  { %2830 = vtanh.f32 %v1306_v27 }
0x1499   :  { %v2829_v30 = vpop.eup %2828 }
0x149a   :  { %v1310_v31 = vadd.f32 1.0, %v2829_v30  ;;  %v2831_v19 = vpop.eup %2830 }
0x149c   :  { %2832 = vrcp.f32 %v1310_v31 }
0x149d   :  { %2834 = vpow2.f32 %v2270_v36 }
0x14a6   :  { %v2833_v20 = vpop.eup %2832 }
0x14a7   :  { %v1314_v33 = vsel %vm3059_vm6, %v2831_v19, %v2833_v20  ;;  %v2835_v38 = vpop.eup %2834 }
0x14a8   :  { %1321 = vrot.lane.b32.xlu1 %v1314_v33, %s2903_s5  ;;  %v1319_v39 = vmul.f32 %v1317_v37, %v1314_v33  ;;  %v1034_v40 = vadd.f32 1.0, %v2835_v38 }
0x151a   :  { %v1322_v34 = vpop.permute.xlu1 %1321 }
0x151b   :  { %v1324_v35 = vmul.f32 %v1322_v34, %v1314_v33 }
0x151d   :  { %1326 = vrot.lane.b32.xlu1 %v1324_v35, %s2904_s17 }
0x158f   :  { %v1327_v41 = vpop.permute.xlu1 %1326 }
0x1590   :  { %v1329_v42 = vadd.f32 %v1327_v41, %v1319_v39 }
0x1592   :  { %2836 = vtanh.f32 %v1329_v42 }
0x1593   :  { %2838 = vrcp.f32 %v1034_v40 }
0x1594   :  { %2840 = vtanh.f32 %v1030_v24 }
0x159c   :  { %v2837_v43 = vpop.eup %2836 }
0x159d   :  { %v2839_v44 = vpop.eup %2838  ;;  %1332 = vrot.lane.b32.xlu0 %v2837_v43, %s2903_s5 }
0x159e   :  { %v2841_v45 = vpop.eup %2840 }
0x159f   :  { %v1038_v46 = vsel %vm3059_vm6, %v2841_v45, %v2839_v44  ;;  %v1193_v45 = vadd.f32 %v3184_v53, %v3249_v13 }
0x15a0   :  { %v1039_v55 = vmul.f32 %v1038_v46, %v3196_v1 }
0x15a1   :  { %1041 = vrot.lane.b32.xlu0 %v1038_v46, %s2903_s5 }
0x160f   :  { %v1333_v47 = vpop.permute.xlu0 %1332 }
0x1610   :  { %v1335_v48 = vmul.f32 %v1333_v47, %v1314_v33 }
0x1612   :  { %1337 = vrot.lane.b32.xlu1 %v1335_v48, %s2904_s17 }
0x1613   :  { %v1042_v49 = vpop.permute.xlu0 %1041 }
0x1614   :  { %v1044_v50 = vmul.f32 %v1042_v49, %v1038_v46 }
0x1616   :  { %1046 = vrot.lane.b32.xlu0 %v1044_v50, %s2904_s17 }
0x1684   :  { %v1338_v52 = vpop.permute.xlu1 %1337 }
0x1685   :  { %1340 = vst.msk [vmem:[#allocation3] sm:$0xff] %vm211_vm3, %v1338_v52  ;;  %2564 = vmatmul.mubr.msk.f32.vlgmr.msra.gmra.mrb[16].mxu1 %vm211_vm3, %v1338_v52 }
0x1686   :  { %2728 = vmatpush3.bf16.msra.mxu1 %v3206_v4  ;;  %2585 = vmatprep.mubr.msk.f32.mxu1 %vm2901_vm2, %v2902_v14 }
0x1687   :  { %2729 = vmatprep.subr.bf16.mxu1 %v2900_v8 }
0x1688   :  { %v1047_v56 = vpop.permute.xlu0 %1046 }
0x1689   :  { %v3269_v22 = vadd.f32 %v1047_v56, %v1039_v55 }
0x168a   :  { %2731 = vmatpush3.bf16.msra.mxu1 %v3216_v9 }
0x168b   :  { %2842 = vtanh.f32 %v3269_v22  ;;  %2738 = vmatprep.subr.bf16.mxu1 %v2900_v8 }
0x1695   :  { %v2843_v59 = vpop.eup %2842 }
0x1696   :  { %1052 = vrot.lane.b32.xlu0 %v2843_v59, %s2903_s5 }
0x1708   :  { %v1053_v60 = vpop.permute.xlu0 %1052 }
0x1709   :  { %v1055_v61 = vmul.f32 %v1053_v60, %v1038_v46 }
0x170b   :  { %1057 = vrot.lane.b32.xlu0 %v1055_v61, %s2904_s17 }
0x1758   :  { %v1410_v63 = vpop.f32.mrb[16].mxu1 }
0x1759   :  { %v1414_v0 = vadd.f32 %v1410_v63, %v1183_v62  ;;  %v2565_v1 = vpop.f32.mrb[17].mxu1 }
0x175b   :  { %v2285_v17 = vmul.f32 -1.442695, %v1414_v0 }
0x175d   :  { %2844 = vpow2.f32 %v2285_v17 }
0x175e   :  { %2846 = vtanh.f32 %v1414_v0 }
0x1767   :  { %v2845_v2 = vpop.eup %2844 }
0x1768   :  { %v1418_v3 = vadd.f32 1.0, %v2845_v2  ;;  %v2847_v5 = vpop.eup %2846 }
0x176a   :  { %2848 = vrcp.f32 %v1418_v3  ;;  %v1198_v3 = vadd.f32 %v3249_v13, %v3190_v58 }
0x1774   :  { %v2849_v7 = vpop.eup %2848 }
0x1775   :  { %v1422_v10 = vsel %vm3059_vm6, %v2847_v5, %v2849_v7 }
0x1776   :  { %1425 = vrot.lane.b32.xlu1 %v1422_v10, %s2903_s5  ;;  %v1423_v23 = vmul.f32 %v1422_v10, %v1329_v42 }
0x177d   :  { %v1058_v11 = vpop.permute.xlu0 %1057 }
0x177e   :  { %1061 = vst.msk [vmem:[#allocation3 + $0x38] sm:$0xff] %vm211_vm3, %v1058_v11  ;;  %1062 = vst.msk [vmem:[%s3470_s12] sm:$0xff] %vm211_vm3, %v1058_v11 }
0x1785   :  { %v1075_v51 = vld [vmem:[#allocation3 + $0x38] sm:$0xff] }
0x1786   :  { %2542 = vmatmul.mubr.msk.f32.gmra.mrb[16].mxu0 %vm211_vm3, %v1075_v51 }
0x1787   :  { %2574 = vmatprep.mubr.msk.f32.mxu0 %vm2901_vm2, %v2902_v14 }
0x17e8   :  { %v1426_v12 = vpop.permute.xlu1 %1425 }
0x17e9   :  { %v1428_v15 = vmul.f32 %v1426_v12, %v1422_v10 }
0x17eb   :  { %1430 = vrot.lane.b32.xlu1 %v1428_v15, %s2904_s17 }
0x1859   :  { %v3290_v18 = vpop.f32.mrb[16].mxu0 }
0x185a   :  { %v3292_v21 = vpop.f32.mrb[17].mxu0 }
0x185d   :  { %v1431_v6 = vpop.permute.xlu1 %1430 }
0x185e   :  { %v1433_v24 = vadd.f32 %v1431_v6, %v1423_v23 }
0x1860   :  { %2850 = vtanh.f32 %v1433_v24 }
0x186a   :  { %v2851_v25 = vpop.eup %2850 }
0x186b   :  { %1436 = vrot.lane.b32.xlu1 %v2851_v25, %s2903_s5 }
0x18dd   :  { %v1437_v26 = vpop.permute.xlu1 %1436 }
0x18de   :  { %v1439_v16 = vmul.f32 %v1437_v26, %v1422_v10 }
0x18e0   :  { %1441 = vrot.lane.b32.xlu1 %v1439_v16, %s2904_s17 }
0x1952   :  { %v1442_v27 = vpop.permute.xlu1 %1441 }
0x1953   :  { %1444 = vst.msk [vmem:[#allocation3 + $0x8] sm:$0xff] %vm211_vm3, %v1442_v27  ;;  %2575 = vmatmul.mubr.msk.f32.vlgmr.msra.gmra.mrb[18].mxu0 %vm211_vm3, %v1442_v27 }
0x1954   :  { %2734 = vmatpush3.bf16.msra.mxu0 %v3206_v4  ;;  %2596 = vmatprep.mubr.msk.f32.mxu0 %vm2901_vm2, %v2902_v14 }
0x1955   :  { %2735 = vmatprep.subr.bf16.mxu0 %v2900_v8 }
0x1958   :  { %2737 = vmatpush3.bf16.msra.mxu0 %v3216_v9 }
0x1959   :  { %2744 = vmatprep.subr.bf16.mxu0 %v2900_v8 }
0x1a26   :  { %v1514_v29 = vpop.f32.mrb[18].mxu0 }
0x1a27   :  { %v1518_v30 = vadd.f32 %v1514_v29, %v1188_v28  ;;  %v2576_v31 = vpop.f32.mrb[19].mxu0 }
0x1a28   :  { %v1203_v31 = vadd.f32 %v3188_v57, %v3249_v13 }
0x1a29   :  { %v2287_v19 = vmul.f32 -1.442695, %v1518_v30 }
0x1a2b   :  { %2852 = vpow2.f32 %v2287_v19 }
0x1a2c   :  { %2854 = vtanh.f32 %v1518_v30 }
0x1a35   :  { %v2853_v20 = vpop.eup %2852 }
0x1a36   :  { %v1522_v33 = vadd.f32 1.0, %v2853_v20  ;;  %v2855_v34 = vpop.eup %2854 }
0x1a38   :  { %2856 = vrcp.f32 %v1522_v33 }
0x1a42   :  { %v2857_v35 = vpop.eup %2856 }
0x1a43   :  { %v1526_v36 = vsel %vm3059_vm6, %v2855_v34, %v2857_v35 }
0x1a44   :  { %1529 = vrot.lane.b32.xlu0 %v1526_v36, %s2903_s5  ;;  %v1527_v54 = vmul.f32 %v1526_v36, %v1433_v24 }
0x1ab6   :  { %v1530_v37 = vpop.permute.xlu0 %1529 }
0x1ab7   :  { %v1532_v38 = vmul.f32 %v1530_v37, %v1526_v36 }
0x1ab9   :  { %1534 = vrot.lane.b32.xlu1 %v1532_v38, %s2904_s17 }
0x1b2b   :  { %v1535_v39 = vpop.permute.xlu1 %1534 }
0x1b2c   :  { %v1537_v40 = vadd.f32 %v1535_v39, %v1527_v54  ;;  %v2085_v39 = vld [vmem:[%s3471_s9] sm:$0xff] }
0x1b2e   :  { %2858 = vtanh.f32 %v1537_v40 }
0x1b38   :  { %v2859_v41 = vpop.eup %2858 }
0x1b39   :  { %1540 = vrot.lane.b32.xlu0 %v2859_v41, %s2903_s5 }
0x1bab   :  { %v1541_v42 = vpop.permute.xlu0 %1540 }
0x1bac   :  { %v1543_v43 = vmul.f32 %v1541_v42, %v1526_v36 }
0x1bae   :  { %1545 = vrot.lane.b32.xlu1 %v1543_v43, %s2904_s17 }
0x1c20   :  { %v1546_v44 = vpop.permute.xlu1 %1545 }
0x1c21   :  { %1548 = vst.msk [vmem:[#allocation3 + $0x10] sm:$0xff] %vm211_vm3, %v1546_v44  ;;  %2586 = vmatmul.mubr.msk.f32.vlgmr.msra.gmra.mrb[18].mxu1 %vm211_vm3, %v1546_v44 }
0x1c22   :  { %2740 = vmatpush3.bf16.msra.mxu1 %v3206_v4  ;;  %2607 = vmatprep.mubr.msk.f32.mxu1 %vm2901_vm2, %v2902_v14 }
0x1c23   :  { %2741 = vmatprep.subr.bf16.mxu1 %v2900_v8 }
0x1c26   :  { %2743 = vmatpush3.bf16.msra.mxu1 %v3216_v9 }
0x1c27   :  { %2750 = vmatprep.subr.bf16.mxu1 %v2900_v8 }
0x1cf4   :  { %v1618_v46 = vpop.f32.mrb[18].mxu1 }
0x1cf5   :  { %v1622_v47 = vadd.f32 %v1618_v46, %v1193_v45  ;;  %v2587_v48 = vpop.f32.mrb[19].mxu1  ;;  %v2087_v45 = vld [vmem:[%s3471_s9 + $0x10] sm:$0xff]  ;;  %v2088_v46 = vld [vmem:[%s3471_s9 + $0x18] sm:$0xff] }
0x1cf7   :  { %v2289_v49 = vmul.f32 -1.442695, %v1622_v47 }
0x1cf9   :  { %2860 = vpow2.f32 %v2289_v49  ;;  %v2077_v49 = vld [vmem:[#allocation3] sm:$0xff] }
0x1cfa   :  { %2862 = vtanh.f32 %v1622_v47  ;;  %v2760_v47 = vpack.c.bf16 %v2088_v46, %v2087_v45 }
0x1d03   :  { %v2861_v50 = vpop.eup %2860 }
0x1d04   :  { %v1626_v52 = vadd.f32 1.0, %v2861_v50  ;;  %v2863_v55 = vpop.eup %2862  ;;  %v2078_v50 = vld [vmem:[#allocation3 + $0x8] sm:$0xff] }
0x1d06   :  { %2864 = vrcp.f32 %v1626_v52  ;;  %v2079_v52 = vld [vmem:[#allocation3 + $0x10] sm:$0xff] }
0x1d10   :  { %v2865_v56 = vpop.eup %2864 }
0x1d11   :  { %v1630_v59 = vsel %vm3059_vm6, %v2863_v55, %v2865_v56 }
0x1d12   :  { %1633 = vrot.lane.b32.xlu0 %v1630_v59, %s2903_s5  ;;  %v1631_v53 = vmul.f32 %v1630_v59, %v1537_v40  ;;  %v2086_v40 = vld [vmem:[%s3471_s9 + $0x8] sm:$0xff] }
0x1d13   :  { %v2756_v41 = vpack.c.bf16 %v2086_v40, %v2085_v39 }
0x1d84   :  { %v1634_v60 = vpop.permute.xlu0 %1633 }
0x1d85   :  { %v1636_v61 = vmul.f32 %v1634_v60, %v1630_v59  ;;  %v1208_v60 = vadd.f32 %v3249_v13, %v3292_v21 }
0x1d87   :  { %1638 = vrot.lane.b32.xlu1 %v1636_v61, %s2904_s17 }
0x1df9   :  { %v1639_v62 = vpop.permute.xlu1 %1638 }
0x1dfa   :  { %v1641_v63 = vadd.f32 %v1639_v62, %v1631_v53 }
0x1dfc   :  { %2866 = vtanh.f32 %v1641_v63 }
0x1e06   :  { %v2867_v0 = vpop.eup %2866 }
0x1e07   :  { %1644 = vrot.lane.b32.xlu0 %v2867_v0, %s2903_s5  ;;  %v3386_v0 = vld [vmem:[%s3472_s10] ss:$0 sm:$0xff] }
0x1e79   :  { %v1645_v1 = vpop.permute.xlu0 %1644 }
0x1e7a   :  { %v1647_v17 = vmul.f32 %v1645_v1, %v1630_v59 }
0x1e7c   :  { %1649 = vrot.lane.b32.xlu1 %v1647_v17, %s2904_s17 }
0x1eee   :  { %v1650_v2 = vpop.permute.xlu1 %1649 }
0x1eef   :  { %1652 = vst.msk [vmem:[#allocation3 + $0x18] sm:$0xff] %vm211_vm3, %v1650_v2  ;;  %2597 = vmatmul.mubr.msk.f32.vlgmr.msra.gmra.mrb[20].mxu0 %vm211_vm3, %v1650_v2 }
0x1ef0   :  { %2746 = vmatpush3.bf16.msra.mxu0 %v3206_v4  ;;  %2618 = vmatprep.mubr.msk.f32.mxu0 %vm2901_vm2, %v2902_v14 }
0x1ef1   :  { %2747 = vmatprep.subr.bf16.mxu0 %v2900_v8 }
0x1ef4   :  { %2749 = vmatpush3.bf16.msra.mxu0 %v3216_v9 }
0x1ef5   :  { %2757 = vmatprep.subr.bf16.mxu0 %v2756_v41 }
0x1ef6   :  { %v2080_v55 = vld [vmem:[#allocation3 + $0x18] sm:$0xff] }
0x1fc2   :  { %v1722_v5 = vpop.f32.mrb[20].mxu0 }
0x1fc3   :  { %v1726_v7 = vadd.f32 %v1722_v5, %v1198_v3  ;;  %v2598_v10 = vpop.f32.mrb[21].mxu0 }
0x1fc5   :  { %v2291_v11 = vmul.f32 -1.442695, %v1726_v7 }
0x1fc7   :  { %2868 = vpow2.f32 %v2291_v11 }
0x1fc8   :  { %2870 = vtanh.f32 %v1726_v7 }
0x1fd1   :  { %v2869_v51 = vpop.eup %2868 }
0x1fd2   :  { %v1730_v12 = vadd.f32 1.0, %v2869_v51  ;;  %v2871_v15 = vpop.eup %2870 }
0x1fd4   :  { %2872 = vrcp.f32 %v1730_v12 }
0x1fde   :  { %v2873_v23 = vpop.eup %2872 }
0x1fdf   :  { %v1734_v6 = vsel %vm3059_vm6, %v2871_v15, %v2873_v23 }
0x1fe0   :  { %1737 = vrot.lane.b32.xlu0 %v1734_v6, %s2903_s5  ;;  %v1735_v58 = vmul.f32 %v1734_v6, %v1641_v63 }
0x2052   :  { %v1738_v24 = vpop.permute.xlu0 %1737 }
0x2053   :  { %v1740_v25 = vmul.f32 %v1738_v24, %v1734_v6 }
0x2055   :  { %1742 = vrot.lane.b32.xlu1 %v1740_v25, %s2904_s17 }
0x20c7   :  { %v1743_v26 = vpop.permute.xlu1 %1742 }
0x20c8   :  { %v1745_v16 = vadd.f32 %v1743_v26, %v1735_v58 }
0x20ca   :  { %2874 = vtanh.f32 %v1745_v16 }
0x20d4   :  { %v2875_v27 = vpop.eup %2874 }
0x20d5   :  { %1748 = vrot.lane.b32.xlu0 %v2875_v27, %s2903_s5 }
0x2147   :  { %v1749_v28 = vpop.permute.xlu0 %1748 }
0x2148   :  { %v1751_v29 = vmul.f32 %v1749_v28, %v1734_v6 }
0x214a   :  { %1753 = vrot.lane.b32.xlu1 %v1751_v29, %s2904_s17 }
0x21bc   :  { %v1754_v30 = vpop.permute.xlu1 %1753 }
0x21bd   :  { %1756 = vst.msk [vmem:[#allocation3 + $0x20] sm:$0xff] %vm211_vm3, %v1754_v30  ;;  %2608 = vmatmul.mubr.msk.f32.vlgmr.msra.gmra.mrb[20].mxu1 %vm211_vm3, %v1754_v30 }
0x21be   :  { %2752 = vmatpush3.bf16.msra.mxu1 %v3206_v4  ;;  %2629 = vmatprep.mubr.msk.f32.mxu1 %vm2901_vm2, %v2902_v14 }
0x21bf   :  { %2753 = vmatprep.subr.bf16.mxu1 %v2900_v8 }
0x21c2   :  { %2755 = vmatpush3.bf16.msra.mxu1 %v3216_v9 }
0x21c4   :  { %v2081_v56 = vld [vmem:[#allocation3 + $0x20] sm:$0xff] }
0x2290   :  { %v1826_v19 = vpop.f32.mrb[20].mxu1 }
0x2291   :  { %v1830_v20 = vadd.f32 %v1826_v19, %v1203_v31  ;;  %v2609_v33 = vpop.f32.mrb[21].mxu1 }
0x2293   :  { %v2293_v34 = vmul.f32 -1.442695, %v1830_v20 }
0x2295   :  { %2876 = vpow2.f32 %v2293_v34  ;;  %v1213_v34 = vadd.f32 %v3290_v18, %v3249_v13 }
0x2296   :  { %2878 = vtanh.f32 %v1830_v20 }
0x229f   :  { %v2877_v35 = vpop.eup %2876 }
0x22a0   :  { %v1834_v36 = vadd.f32 1.0, %v2877_v35  ;;  %v2879_v4 = vpop.eup %2878 }
0x22a2   :  { %2880 = vrcp.f32 %v1834_v36 }
0x22ac   :  { %v2881_v37 = vpop.eup %2880 }
0x22ad   :  { %v1838_v14 = vsel %vm3059_vm6, %v2879_v4, %v2881_v37 }
0x22ae   :  { %1841 = vrot.lane.b32.xlu0 %v1838_v14, %s2903_s5  ;;  %v1839_v57 = vmul.f32 %v1838_v14, %v1745_v16 }
0x2320   :  { %v1842_v8 = vpop.permute.xlu0 %1841 }
0x2321   :  { %v1844_v9 = vmul.f32 %v1842_v8, %v1838_v14 }
0x2323   :  { %1846 = vrot.lane.b32.xlu1 %v1844_v9, %s2904_s17 }
0x2395   :  { %v1847_v38 = vpop.permute.xlu1 %1846 }
0x2396   :  { %v3356_v54 = vadd.f32 %v1847_v38, %v1839_v57 }
0x2398   :  { %2882 = vtanh.f32 %v3356_v54 }
0x23a2   :  { %v2883_v42 = vpop.eup %2882 }
0x23a3   :  { %1852 = vrot.lane.b32.xlu0 %v2883_v42, %s2903_s5 }
0x2415   :  { %v1853_v43 = vpop.permute.xlu0 %1852 }
0x2416   :  { %v1855_v44 = vmul.f32 %v1853_v43, %v1838_v14 }
0x2418   :  { %1857 = vrot.lane.b32.xlu1 %v1855_v44, %s2904_s17 }
0x248a   :  { %v1858_v48 = vpop.permute.xlu1 %1857 }
0x248b   :  { %1860 = vst.msk [vmem:[#allocation3 + $0x28] sm:$0xff] %vm211_vm3, %v1858_v48  ;;  %2619 = vmatmul.mubr.msk.f32.vlgmr.msra.gmra.mrb[22].mxu0 %vm211_vm3, %v1858_v48 }
0x248c   :  { %2759 = vmatpush3.bf16.msra.mxu0 %v2756_v41  ;;  %2640 = vmatprep.mubr.msk.f32.mxu0 %vm211_vm3, %v2077_v49 }
0x248d   :  { %2761 = vmatprep.subr.bf16.mxu0 %v2760_v47 }
0x2490   :  { %2763 = vmatpush3.bf16.msra.mxu0 %v2760_v47 }
0x2492   :  { %v2082_v59 = vld [vmem:[#allocation3 + $0x28] sm:$0xff] }
0x2493   :  { %2641 = vmatmul.mubr.msk.f32.vlgmr.msra.gmra.mrb[24].mxu0 %vm211_vm3, %v2078_v50 }
0x2494   :  { %2643 = vmatprep.mubr.msk.f32.mxu0 %vm211_vm3, %v2079_v52 }
0x2497   :  { %2644 = vmatmul.mubr.msk.f32.gmra.mrb[26].mxu0 %vm211_vm3, %v2080_v55 }
0x2498   :  { %2646 = vmatprep.mubr.msk.f32.mxu0 %vm211_vm3, %v2081_v56 }
0x249b   :  { %2647 = vmatmul.mubr.msk.f32.gmra.mrb[28].mxu0 %vm211_vm3, %v2082_v59 }
0x255e   :  { %v1930_v61 = vpop.f32.mrb[22].mxu0 }
0x255f   :  { %v1934_v53 = vadd.f32 %v1930_v61, %v1208_v60  ;;  %v2620_v62 = vpop.f32.mrb[23].mxu0 }
0x2561   :  { %v2295_v63 = vmul.f32 -1.442695, %v1934_v53 }
0x2563   :  { %2884 = vpow2.f32 %v2295_v63 }
0x2564   :  { %2886 = vtanh.f32 %v1934_v53 }
0x2566   :  { %v2642_v1 = vpop.f32.mrb[24].mxu0 }
0x2567   :  { %v2192_v17 = vadd.f32 %v2642_v1, %v3386_v0  ;;  %v2186_v2 = vpop.f32.mrb[25].mxu0 }
0x2568   :  { %v2187_v3 = vadd.f32 %v3386_v0, %v2186_v2 }
0x2569   :  { %2226 = vst.msk [vmem:[%s3473_s11 + $0x8] sm:$0xff] %vm62_vm1, %v2192_v17 }
0x256a   :  { %2225 = vst.msk [vmem:[%s3473_s11] sm:$0xff] %vm62_vm1, %v2187_v3  ;;  %v2645_v21 = vpop.f32.mrb[26].mxu0 }
0x256b   :  { %v2202_v5 = vadd.f32 %v2645_v21, %v3386_v0  ;;  %v2196_v7 = vpop.f32.mrb[27].mxu0 }
0x256c   :  { %v2197_v10 = vadd.f32 %v3386_v0, %v2196_v7 }
0x256d   :  { %v2885_v11 = vpop.eup %2884  ;;  %2228 = vst.msk [vmem:[%s3473_s11 + $0x18] sm:$0xff] %vm62_vm1, %v2202_v5 }
0x256e   :  { %v1938_v51 = vadd.f32 1.0, %v2885_v11  ;;  %2227 = vst.msk [vmem:[%s3473_s11 + $0x10] sm:$0xff] %vm62_vm1, %v2197_v10  ;;  %v2648_v12 = vpop.f32.mrb[28].mxu0  ;;  %v2887_v24 = vpop.eup %2886 }
0x256f   :  { %v2212_v15 = vadd.f32 %v2648_v12, %v3386_v0  ;;  %v2206_v23 = vpop.f32.mrb[29].mxu0 }
0x2570   :  { %2888 = vrcp.f32 %v1938_v51  ;;  %v2207_v6 = vadd.f32 %v3386_v0, %v2206_v23 }
0x2571   :  { %2230 = vst.msk [vmem:[%s3473_s11 + $0x28] sm:$0xff] %vm62_vm1, %v2212_v15 }
0x2572   :  { %2229 = vst.msk [vmem:[%s3473_s11 + $0x20] sm:$0xff] %vm62_vm1, %v2207_v6 }
0x257a   :  { %v2889_v25 = vpop.eup %2888 }
0x257b   :  { %v1942_v58 = vsel %vm3059_vm6, %v2887_v24, %v2889_v25 }
0x257c   :  { %1945 = vrot.lane.b32.xlu0 %v1942_v58, %s2903_s5  ;;  %v1943_v27 = vmul.f32 %v1942_v58, %v3356_v54 }
0x25ee   :  { %v1946_v26 = vpop.permute.xlu0 %1945 }
0x25ef   :  { %v1948_v16 = vmul.f32 %v1946_v26, %v1942_v58 }
0x25f1   :  { %1950 = vrot.lane.b32.xlu1 %v1948_v16, %s2904_s17 }
0x2663   :  { %v1951_v28 = vpop.permute.xlu1 %1950 }
0x2664   :  { %v1953_v29 = vadd.f32 %v1951_v28, %v1943_v27 }
0x2666   :  { %2890 = vtanh.f32 %v1953_v29 }
0x2670   :  { %v2891_v30 = vpop.eup %2890 }
0x2671   :  { %1956 = vrot.lane.b32.xlu0 %v2891_v30, %s2903_s5 }
0x26e3   :  { %v1957_v31 = vpop.permute.xlu0 %1956 }
0x26e4   :  { %v1959_v19 = vmul.f32 %v1957_v31, %v1942_v58 }
0x26e6   :  { %1961 = vrot.lane.b32.xlu1 %v1959_v19, %s2904_s17 }
0x2758   :  { %v1962_v20 = vpop.permute.xlu1 %1961 }
0x2759   :  { %1964 = vst.msk [vmem:[#allocation3 + $0x30] sm:$0xff] %vm211_vm3, %v1962_v20  ;;  %2630 = vmatmul.mubr.msk.f32.vlgmr.msra.gmra.mrb[22].mxu1 %vm211_vm3, %v1962_v20 }
0x2760   :  { %v2083_v33 = vld [vmem:[#allocation3 + $0x30] sm:$0xff] }
0x2761   :  { %2649 = vmatprep.mubr.msk.f32.mxu0 %vm211_vm3, %v2083_v33 }
0x282c   :  { %v2034_v35 = vpop.f32.mrb[22].mxu1 }
0x282d   :  { %v2038_v36 = vadd.f32 %v2034_v35, %v1213_v34  ;;  %v2631_v4 = vpop.f32.mrb[23].mxu1 }
0x282f   :  { %v2297_v37 = vmul.f32 -1.442695, %v2038_v36 }
0x2831   :  { %2892 = vpow2.f32 %v2297_v37 }
0x2832   :  { %2894 = vtanh.f32 %v2038_v36 }
0x283b   :  { %v2893_v14 = vpop.eup %2892 }
0x283c   :  { %v2042_v8 = vadd.f32 1.0, %v2893_v14  ;;  %v2895_v9 = vpop.eup %2894 }
0x283e   :  { %2896 = vrcp.f32 %v2042_v8 }
0x2848   :  { %v2897_v57 = vpop.eup %2896 }
0x2849   :  { %v2046_v38 = vsel %vm3059_vm6, %v2895_v9, %v2897_v57 }
0x284a   :  { %2049 = vrot.lane.b32.xlu0 %v2046_v38, %s2903_s5  ;;  %v2047_v13 = vmul.f32 %v2046_v38, %v1953_v29 }
0x28bc   :  { %v2050_v54 = vpop.permute.xlu0 %2049 }
0x28bd   :  { %v2052_v39 = vmul.f32 %v2050_v54, %v2046_v38 }
0x28bf   :  { %2054 = vrot.lane.b32.xlu1 %v2052_v39, %s2904_s17 }
0x2931   :  { %v2055_v18 = vpop.permute.xlu1 %2054 }
0x2932   :  { %v2057_v40 = vadd.f32 %v2055_v18, %v2047_v13 }
0x2934   :  { %2898 = vtanh.f32 %v2057_v40 }
0x293e   :  { %v2899_v41 = vpop.eup %2898 }
0x293f   :  { %2060 = vrot.lane.b32.xlu0 %v2899_v41, %s2903_s5 }
0x2943   :  { %1064 = vrot.lane.b32.xlu0 %v3269_v22, %s2905_s1 }
0x29b1   :  { %v2061_v42 = vpop.permute.xlu0 %2060 }
0x29b2   :  { %v2063_v43 = vmul.f32 %v2061_v42, %v2046_v38 }
0x29b4   :  { %2065 = vrot.lane.b32.xlu1 %v2063_v43, %s2904_s17 }
0x29b5   :  { %v1065_v32 = vpop.permute.xlu0 %1064 }
0x29b6   :  { %1067 = vst.msk [vmem:[%s3474_s13] sm:$0xff] %vm211_vm3, %v1065_v32 }
0x29b8   :  { %2072 = vrot.lane.b32.xlu1 %v2057_v40, %s2905_s1 }
0x2a26   :  { %v2066_v44 = vpop.permute.xlu1 %2065 }
0x2a27   :  { %2068 = vst.msk [vmem:[#allocation3 + $0x38] sm:$0xff] %vm211_vm3, %v2066_v44  ;;  %2298 = vst.msk [vmem:[%s3470_s12 + $0x8] sm:$0xff] %vm211_vm3, %v2066_v44 }
0x2a2a   :  { %v2073_v22 = vpop.permute.xlu1 %2072 }
0x2a2b   :  { %2299 = vst.msk [vmem:[%s3474_s13 + $0x8] sm:$0xff] %vm211_vm3, %v2073_v22 }
0x2a2e   :  { %v2084_v45 = vld [vmem:[#allocation3 + $0x38] sm:$0xff] }
0x2a2f   :  { %2650 = vmatmul.mubr.msk.f32.gmra.mrb[30].mxu0 %vm211_vm3, %v2084_v45 }
0x2b02   :  { %v2651_v46 = vpop.f32.mrb[30].mxu0 }
0x2b03   :  { %v2222_v47 = vadd.f32 %v2651_v46, %v3386_v0  ;;  %v2216_v48 = vpop.f32.mrb[31].mxu0 }
0x2b04   :  { %v2217_v49 = vadd.f32 %v3386_v0, %v2216_v48 }
0x2b05   :  { %2232 = vst.msk [vmem:[%s3473_s11 + $0x38] sm:$0xff] %vm62_vm1, %v2222_v47 }
0x2b06   :  { %2231 = vst.msk [vmem:[%s3473_s11 + $0x30] sm:$0xff] %vm62_vm1, %v2217_v49 }

</bundles_post_ra>
